<compile_context>
chip_gen: v7x
topology: tpu7x:2x2x1
jax: 0.10.0
libtpu: 0.0.40
codegen_flags: <defaults>
</compile_context>

<pallas_src>
import math
from functools import partial

import jax
import jax.numpy as jnp
from jax.experimental import pallas as pl
from jax.experimental.pallas import tpu as pltpu


def _hw_config():
    """Pick scoped-VMEM limit and row-tile target per TPU generation."""
    try:
        cap = int(getattr(pltpu.get_tpu_info(), "vmem_capacity_bytes", 0))
    except Exception:
        cap = 0
    if cap >= 100 * 1024 * 1024:          # 128 MiB parts (v5e / v6e): big tiles, big limit
        return 96 * 1024 * 1024, 512
    return 32 * 1024 * 1024, 256          # 64 MiB parts (v7x) / unknown: stay conservative


_VMEM_LIMIT, _ROW_TILE_TARGET = _hw_config()


def _row_tile(m):
    """Largest row tile <= target; full rows when the array is small."""
    if m <= _ROW_TILE_TARGET:
        return m, 1
    return _ROW_TILE_TARGET, pl.cdiv(m, _ROW_TILE_TARGET)


def _cparams():
    return pltpu.CompilerParams(
        dimension_semantics=("parallel", "parallel"),
        vmem_limit_bytes=_VMEM_LIMIT)


# --------------------------- K1: LayerNorm + QKV -----------------------------

def _ln_linear_kernel(x_ref, g_ref, b_ref, w_ref, bias_ref, o_ref, *, eps):
    x = x_ref[0].astype(jnp.float32)                       # [TM, C]
    mean = jnp.mean(x, axis=-1, keepdims=True)
    xc = x - mean
    var = jnp.mean(xc * xc, axis=-1, keepdims=True)
    xn = (xc * jax.lax.rsqrt(var + eps) * g_ref[0] + b_ref[0]).astype(w_ref.dtype)
    acc = jnp.dot(xn, w_ref[...], preferred_element_type=jnp.float32)
    o_ref[0] = (acc + bias_ref[...]).astype(o_ref.dtype)


def ln_qkv(x, ln_g, ln_b, w, b, eps=1e-5):
    # x: [2, M, C] f32; ln_g/ln_b: [2, 1, C] f32; w: [C, 3C] bf16; b: [1, 3C] f32 -> [2, M, 3C] bf16
    _, M, C = x.shape
    N3 = w.shape[1]
    TM, nrb = _row_tile(M)
    return pl.pallas_call(
        partial(_ln_linear_kernel, eps=eps),
        out_shape=jax.ShapeDtypeStruct((2, M, N3), jnp.bfloat16),
        grid=(2, nrb),
        in_specs=[pl.BlockSpec((1, TM, C), lambda m, r: (m, r, 0)),
                  pl.BlockSpec((1, 1, C), lambda m, r: (m, 0, 0)),
                  pl.BlockSpec((1, 1, C), lambda m, r: (m, 0, 0)),
                  pl.BlockSpec((C, N3), lambda m, r: (0, 0)),
                  pl.BlockSpec((1, N3), lambda m, r: (0, 0))],
        out_specs=pl.BlockSpec((1, TM, N3), lambda m, r: (m, r, 0)),
        compiler_params=_cparams(),
    )(x, ln_g, ln_b, w, b)


# --------------------- K2: asymmetric attention (fused) ----------------------

def _asym_attn_kernel(qkv_ref, qkvo_ref, *out_refs,
                      lens_mt, num_heads, head_dim, dim, return_attention):
    f32 = jnp.float32
    o_ref = out_refs[0]
    C = dim

    qkv = qkv_ref[0, 0]                    # [N, 3C] (bf16) own modality; Q columns pre-scaled
    qkv_o = qkvo_ref[0, 0]                 # other modality (template rows, or full N rows)
    q = qkv[:, :C]
    k = qkv[:, C:2 * C]
    v = qkv[:, 2 * C:]
    ko = qkv_o[:, C:2 * C]
    vo = qkv_o[:, 2 * C:]

    out_cols = []
    p_own_heads, p_oth_heads = [], []

    for h in range(num_heads):
        c0, c1 = h * head_dim, (h + 1) * head_dim
        q_h, k_h, v_h = q[:, c0:c1], k[:, c0:c1], v[:, c0:c1]
        q_mt, q_s = q_h[:lens_mt], q_h[lens_mt:]
        k_mt, k_s = k_h[:lens_mt], k_h[lens_mt:]
        v_mt, v_s = v_h[:lens_mt], v_h[lens_mt:]
        ko_mt = ko[:lens_mt, c0:c1]
        vo_mt = vo[:lens_mt, c0:c1]

        # (1) template self-attention (own modality only)
        s_t = jnp.einsum('qd,kd->qk', q_mt, k_mt, preferred_element_type=f32)
        s_t = s_t - jnp.max(s_t, axis=-1, keepdims=True)
        p_t = jnp.exp(s_t)
        p_t = p_t * pl.reciprocal(jnp.sum(p_t, axis=-1, keepdims=True), approx=True)
        o_t = jnp.dot(p_t.astype(v_mt.dtype), v_mt, preferred_element_type=f32)

        # (2) search attention over {own template, other template, own search};
        #     K/V union built once in VMEM (never concatenated in HBM).
        k_all = jnp.concatenate([k_mt, ko_mt, k_s], axis=0)
        v_all = jnp.concatenate([v_mt, vo_mt, v_s], axis=0)
        s_s = jnp.einsum('qd,kd->qk', q_s, k_all, preferred_element_type=f32)
        s_s = s_s - jnp.max(s_s, axis=-1, keepdims=True)
        p_s = jnp.exp(s_s)
        p_s = p_s * pl.reciprocal(jnp.sum(p_s, axis=-1, keepdims=True), approx=True)
        o_s = jnp.dot(p_s.astype(v_all.dtype), v_all, preferred_element_type=f32)

        out_cols.append(jnp.concatenate([o_t, o_s], axis=0).astype(o_ref.dtype))

        # (3) optional template->search attention map (joint softmax over both searches);
        #     exact divide here because this drives candidate-elimination top-k.
        if return_attention:
            ko_s = ko[lens_mt:, c0:c1]
            s_own = jnp.einsum('qd,kd->qk', q_mt, k_s, preferred_element_type=f32)
            s_oth = jnp.einsum('qd,kd->qk', q_mt, ko_s, preferred_element_type=f32)
            m2 = jnp.maximum(jnp.max(s_own, axis=-1, keepdims=True),
                             jnp.max(s_oth, axis=-1, keepdims=True))
            e_own = jnp.exp(s_own - m2)
            e_oth = jnp.exp(s_oth - m2)
            inv2 = 1.0 / (jnp.sum(e_own, axis=-1, keepdims=True)
                          + jnp.sum(e_oth, axis=-1, keepdims=True))
            p_own_heads.append(e_own * inv2)
            p_oth_heads.append(e_oth * inv2)

    # Single lane-dense [N, C] store (head-merged), instead of 2*H masked slab stores.
    o_ref[0, 0] = jnp.concatenate(out_cols, axis=-1).astype(o_ref.dtype)

    if return_attention:
        t2s_ref, red_ref = out_refs[1], out_refs[2]
        p_own = jnp.stack(p_own_heads, axis=0)       # [H, Lmt, Ls]
        p_oth = jnp.stack(p_oth_heads, axis=0)

        # Returned map column order is always [V-search | I-search]; order by modality
        # with pl.when branches (no whole-tensor selects).
        @pl.when(pl.program_id(0) == 0)
        def _():
            full = jnp.concatenate([p_own, p_oth], axis=-1)
            t2s_ref[0] = full.astype(t2s_ref.dtype)
            red = jnp.sum(jnp.sum(full, axis=0), axis=0)
            red_ref[0, 0] = red[None, :].astype(red_ref.dtype)

        @pl.when(pl.program_id(0) != 0)
        def _():
            full = jnp.concatenate([p_oth, p_own], axis=-1)
            t2s_ref[0] = full.astype(t2s_ref.dtype)
            red = jnp.sum(jnp.sum(full, axis=0), axis=0)
            red_ref[0, 0] = red[None, :].astype(red_ref.dtype)


def asym_attention_fused(qkv, lens_mt, num_heads, return_attention):
    # qkv: [2, B, N, 3C] bf16 (Q columns pre-scaled by head_dim**-0.5).
    _, B, N, C3 = qkv.shape
    C = C3 // 3
    hd = C // num_heads

    kernel = partial(_asym_attn_kernel, lens_mt=lens_mt, num_heads=num_heads,
                     head_dim=hd, dim=C, return_attention=return_attention)

    own_spec = pl.BlockSpec((1, 1, N, C3), lambda m, b: (m, b, 0, 0))
    # Other modality: template rows only (when possible); full rows when the t2s map is needed
    # or when lens_mt would violate the sublane-tiling rule.
    oth_rows = N if (return_attention or lens_mt % 8 != 0) else lens_mt
    oth_spec = pl.BlockSpec((1, 1, oth_rows, C3), lambda m, b: (1 - m, b, 0, 0))

    out_shapes = [jax.ShapeDtypeStruct((2, B, N, C), jnp.bfloat16)]
    out_specs = [pl.BlockSpec((1, 1, N, C), lambda m, b: (m, b, 0, 0))]
    if return_attention:
        lens_s = N - lens_mt
        assert lens_mt % 8 == 0, "template length (t_h*t_w*2) must be a multiple of 8"
        out_shapes += [jax.ShapeDtypeStruct((B, num_heads, 2 * lens_mt, 2 * lens_s), jnp.float32),
                       jax.ShapeDtypeStruct((2, B, 1, 2 * lens_s), jnp.float32)]
        out_specs += [pl.BlockSpec((1, num_heads, lens_mt, 2 * lens_s),
                                   lambda m, b: (b, 0, m, 0)),
                      pl.BlockSpec((1, 1, 1, 2 * lens_s), lambda m, b: (m, b, 0, 0))]

    outs = pl.pallas_call(
        kernel,
        out_shape=tuple(out_shapes) if return_attention else out_shapes[0],
        grid=(2, B),
        in_specs=[own_spec, oth_spec],
        out_specs=tuple(out_specs) if return_attention else out_specs[0],
        compiler_params=_cparams(),
    )(qkv, qkv)

    if return_attention:
        return outs[0], outs[1], outs[2]
    return outs, None, None


# ------------------------- K3: proj + residual add ---------------------------

def _proj_residual_kernel(x_ref, res_ref, w_ref, b_ref, o_ref):
    acc = jnp.dot(x_ref[0], w_ref[...], preferred_element_type=jnp.float32)
    o_ref[0] = (res_ref[0].astype(jnp.float32) + acc + b_ref[...]).astype(o_ref.dtype)


def proj_residual(x, res, w, b):
    # x: [2, M, C] bf16; res: [2, M, C] f32; w: [C, C] bf16; b: [1, C] f32
    _, M, C = x.shape
    TM, nrb = _row_tile(M)
    return pl.pallas_call(
        _proj_residual_kernel,
        out_shape=jax.ShapeDtypeStruct((2, M, C), res.dtype),
        grid=(2, nrb),
        in_specs=[pl.BlockSpec((1, TM, C), lambda m, r: (m, r, 0)),
                  pl.BlockSpec((1, TM, C), lambda m, r: (m, r, 0)),
                  pl.BlockSpec((C, C), lambda m, r: (0, 0)),
                  pl.BlockSpec((1, C), lambda m, r: (0, 0))],
        out_specs=pl.BlockSpec((1, TM, C), lambda m, r: (m, r, 0)),
        input_output_aliases={1: 0},            # residual buffer reused for the output
        compiler_params=_cparams(),
    )(x, res, w, b)


# ------------------- K4: LayerNorm2 + MLP(GELU) + residual -------------------

def _ln_mlp_residual_kernel(x_ref, g_ref, b_ref, w1_ref, b1_ref, w2_ref, b2_ref,
                            o_ref, *, eps):
    x = x_ref[0].astype(jnp.float32)                       # [TM, C] (also the residual)
    mean = jnp.mean(x, axis=-1, keepdims=True)
    xc = x - mean
    var = jnp.mean(xc * xc, axis=-1, keepdims=True)
    xn = (xc * jax.lax.rsqrt(var + eps) * g_ref[0] + b_ref[0]).astype(w1_ref.dtype)
    h = jnp.dot(xn, w1_ref[...], preferred_element_type=jnp.float32) + b1_ref[...]
    h = 0.5 * h * (1.0 + jax.lax.erf(h * 0.7071067811865476))   # exact GELU
    h = h.astype(w2_ref.dtype)
    out = jnp.dot(h, w2_ref[...], preferred_element_type=jnp.float32) + b2_ref[...]
    o_ref[0] = (x + out).astype(o_ref.dtype)


def ln_mlp_residual(x, ln_g, ln_b, w1, b1, w2, b2, eps=1e-5):
    # x: [2, M, C] f32; w1: [C, H] bf16; w2: [H, C] bf16
    _, M, C = x.shape
    Hm = w1.shape[1]
    TM, nrb = _row_tile(M)
    return pl.pallas_call(
        partial(_ln_mlp_residual_kernel, eps=eps),
        out_shape=jax.ShapeDtypeStruct((2, M, C), x.dtype),
        grid=(2, nrb),
        in_specs=[pl.BlockSpec((1, TM, C), lambda m, r: (m, r, 0)),
                  pl.BlockSpec((1, 1, C), lambda m, r: (m, 0, 0)),
                  pl.BlockSpec((1, 1, C), lambda m, r: (m, 0, 0)),
                  pl.BlockSpec((C, Hm), lambda m, r: (0, 0)),
                  pl.BlockSpec((1, Hm), lambda m, r: (0, 0)),
                  pl.BlockSpec((Hm, C), lambda m, r: (0, 0)),
                  pl.BlockSpec((1, C), lambda m, r: (0, 0))],
        out_specs=pl.BlockSpec((1, TM, C), lambda m, r: (m, r, 0)),
        input_output_aliases={0: 0},
        compiler_params=_cparams(),
    )(x, ln_g, ln_b, w1, b1, w2, b2)


# ------------------------ Candidate elimination (glue) -----------------------

def get_token_from_attn(attn, tokens, lens_t, lens_keep, global_index):
    order = jnp.argsort(-attn, axis=1)                    # descending
    topk_idx = order[:, :lens_keep]
    non_topk_idx = order[:, lens_keep:]
    keep_index = jnp.take_along_axis(global_index, topk_idx, axis=1)
    removed_index = jnp.take_along_axis(global_index, non_topk_idx, axis=1)
    tokens_t = tokens[:, :lens_t, :]
    tokens_s = tokens[:, lens_t:, :]
    attentive = jnp.take_along_axis(tokens_s, topk_idx[:, :, None], axis=1)
    tokens_new = jnp.concatenate([tokens_t, attentive], axis=1)
    return tokens_new, keep_index, removed_index


def candidate_elimination_from_mean(attn_mean, tokens_v, tokens_i, lens_mt,
                                    keep_ratio, gi_v, gi_i):
    """CE driven by the fused [B, 2*lens_s] head/row-mean produced inside K2."""
    lens_s = attn_mean.shape[1] // 2
    lens_keep = math.ceil(keep_ratio * lens_s)
    if lens_keep == lens_s:
        return tokens_v, tokens_i, gi_v, gi_i, None, None
    attn_v = attn_mean[:, :lens_s]
    attn_i = attn_mean[:, lens_s:]
    tv, kv, rv = get_token_from_attn(attn_v, tokens_v, lens_mt, lens_keep, gi_v)
    ti, ki, ri = get_token_from_attn(attn_i, tokens_i, lens_mt, lens_keep, gi_i)
    return tv, ti, kv, ki, rv, ri


def candidate_elimination(attn, tokens_v, tokens_i, keep_ratio, gi_v, gi_i, box_mask_z):
    """Full-map API (used by the pure-JAX reference)."""
    bs, hn, lens_mt_vi, lens_s_2 = attn.shape
    lens_s = lens_s_2 // 2
    lens_mt = lens_mt_vi // 2
    lens_keep = math.ceil(keep_ratio * lens_s)
    if lens_keep == lens_s:
        return tokens_v, tokens_i, gi_v, gi_i, None, None
    if box_mask_z is not None:
        # TODO(synk): masked-template attention accumulation (box_mask_z path) not implemented.
        raise NotImplementedError("box_mask_z path not implemented")
    attn_m = attn.mean(axis=2).mean(axis=1)               # [B, 2*lens_s]
    return candidate_elimination_from_mean(attn_m, tokens_v, tokens_i, lens_mt,
                                           keep_ratio, gi_v, gi_i)


# ------------------------------ CE_Block_Shared ------------------------------

def init_params(key, dim, num_heads, mlp_ratio=4.0):
    hidden = int(dim * mlp_ratio)
    ks = jax.random.split(key, 5)
    s = 0.02
    f32, bf16 = jnp.float32, jnp.bfloat16
    return {
        "ln1v_g": jnp.ones((1, dim), f32), "ln1v_b": jnp.zeros((1, dim), f32),
        "ln1i_g": jnp.ones((1, dim), f32), "ln1i_b": jnp.zeros((1, dim), f32),
        "ln2v_g": jnp.ones((1, dim), f32), "ln2v_b": jnp.zeros((1, dim), f32),
        "ln2i_g": jnp.ones((1, dim), f32), "ln2i_b": jnp.zeros((1, dim), f32),
        "w_qkv": (s * jax.random.normal(ks[0], (dim, 3 * dim))).astype(bf16),
        "b_qkv": jnp.zeros((1, 3 * dim), f32),             # qkv_bias=False -> zero bias
        "w_proj": (s * jax.random.normal(ks[1], (dim, dim))).astype(bf16),
        "b_proj": (s * jax.random.normal(ks[2], (1, dim))).astype(f32),
        "w_fc1": (s * jax.random.normal(ks[3], (dim, hidden))).astype(bf16),
        "b_fc1": jnp.zeros((1, hidden), f32),
        "w_fc2": (s * jax.random.normal(ks[4], (hidden, dim))).astype(bf16),
        "b_fc2": jnp.zeros((1, dim), f32),
    }


def ce_block_shared_forward(params, x_v, x_i, t_h, t_w, s_h, s_w,
                            global_index_search_v, global_index_search_i,
                            num_heads, block_keep_ratio_search=1.0,
                            ce_template_mask=None, keep_ratio_search=None):
    # TODO(synk): dropout / drop-path are identity (module defaults p=0; eval-mode forward).
    exe_ce = (block_keep_ratio_search < 1 and
              (keep_ratio_search is None or keep_ratio_search < 1))
    B, N, C = x_v.shape
    hd = C // num_heads
    scale = hd ** (-0.5)
    lens_mt = t_h * t_w * 2

    if exe_ce and ce_template_mask is not None:
        # TODO(synk): masked-template attention accumulation (box_mask_z path) not implemented.
        raise NotImplementedError("ce_template_mask path not implemented")

    x_stack = jnp.stack([x_v, x_i], axis=0)                # [2, B, N, C] residual (f32)

    # Fold the softmax scale into the Q columns of the resident QKV weight/bias
    # (removes one [N, C] VPU multiply per attention grid step).
    col_scale = jnp.concatenate([jnp.full((C,), scale, jnp.float32),
                                 jnp.ones((2 * C,), jnp.float32)])
    w_qkv = (params["w_qkv"].astype(jnp.float32) * col_scale[None, :]).astype(jnp.bfloat16)
    b_qkv = params["b_qkv"].astype(jnp.float32) * col_scale[None, :]

    # ---- K1: fused LayerNorm1 + QKV (bf16 matmul, f32 accumulate) ----
    ln1_g = jnp.stack([params["ln1v_g"], params["ln1i_g"]], axis=0)   # [2, 1, C]
    ln1_b = jnp.stack([params["ln1v_b"], params["ln1i_b"]], axis=0)
    qkv = ln_qkv(x_stack.reshape(2, B * N, C), ln1_g, ln1_b, w_qkv, b_qkv)
    qkv = qkv.reshape(2, B, N, 3 * C)        # free reshape; no HBM head-split transpose

    # ---- K2: fused asymmetric attention (+ optional t2s map + fused CE reduction) ----
    x_attn, attn_t2s, attn_red = asym_attention_fused(qkv, lens_mt, num_heads, exe_ce)

    # ---- K3: fused proj + residual ----
    x_res = proj_residual(x_attn.reshape(2, B * N, C),
                          x_stack.reshape(2, B * N, C),
                          params["w_proj"], params["b_proj"]).reshape(2, B, N, C)
    x_v1, x_i1 = x_res[0], x_res[1]

    removed_v = removed_i = None
    gi_v, gi_i = global_index_search_v, global_index_search_i
    if exe_ce:
        kr = block_keep_ratio_search if keep_ratio_search is None else keep_ratio_search
        attn_mean = (attn_red[0, :, 0, :] + attn_red[1, :, 0, :]) / (2.0 * lens_mt * num_heads)
        x_v1, x_i1, gi_v, gi_i, removed_v, removed_i = candidate_elimination_from_mean(
            attn_mean, x_v1, x_i1, lens_mt, kr, gi_v, gi_i)
        x2 = jnp.stack([x_v1, x_i1], axis=0)
    else:
        x2 = x_res

    # ---- K4: fused LayerNorm2 + MLP(GELU) + residual ----
    B2, N2 = x2.shape[1], x2.shape[2]
    ln2_g = jnp.stack([params["ln2v_g"], params["ln2i_g"]], axis=0)
    ln2_b = jnp.stack([params["ln2v_b"], params["ln2i_b"]], axis=0)
    x_out = ln_mlp_residual(x2.reshape(2, B2 * N2, C), ln2_g, ln2_b,
                            params["w_fc1"], params["b_fc1"],
                            params["w_fc2"], params["b_fc2"]).reshape(2, B2, N2, C)
    return x_out[0], x_out[1], gi_v, gi_i, removed_v, removed_i, attn_t2s


# ----------------------- pure-JAX reference (validation) ---------------------

def reference_forward(params, x_v, x_i, t_h, t_w, gi_v, gi_i, num_heads,
                      keep_ratio, eps=1e-5):
    B, N, C = x_v.shape
    hd = C // num_heads
    scale = hd ** (-0.5)
    lens_mt = t_h * t_w * 2
    exe_ce = keep_ratio < 1
    f32 = jnp.float32
    wq = params["w_qkv"].astype(f32)
    wp = params["w_proj"].astype(f32)
    w1 = params["w_fc1"].astype(f32)
    w2 = params["w_fc2"].astype(f32)

    def ln(x, g, b):
        mu = jnp.mean(x, axis=-1, keepdims=True)
        var = jnp.mean((x - mu) ** 2, axis=-1, keepdims=True)
        return (x - mu) * jax.lax.rsqrt(var + eps) * g + b

    def merge(t):  # [B, H, L, hd] -> [B, L, C]
        return jnp.transpose(t, (0, 2, 1, 3)).reshape(B, t.shape[2], C)

    def sdpa(q, k, v):
        s = jnp.einsum('bhqd,bhkd->bhqk', q, k) * scale
        return jnp.einsum('bhqk,bhkd->bhqd', jax.nn.softmax(s, axis=-1), v)

    x_vi = jnp.concatenate([x_v, x_i], axis=0)
    xvn = ln(x_v, params["ln1v_g"], params["ln1v_b"])
    xin = ln(x_i, params["ln1i_g"], params["ln1i_b"])
    qkv = jnp.concatenate([xvn, xin], axis=0) @ wq + params["b_qkv"]
    qkv = jnp.transpose(qkv.reshape(2 * B, N, 3, num_heads, hd), (2, 0, 3, 1, 4))
    qV, kV, vV = qkv[0, :B], qkv[1, :B], qkv[2, :B]
    qI, kI, vI = qkv[0, B:], qkv[1, B:], qkv[2, B:]
    q_mt_V, q_s_V = qV[:, :, :lens_mt], qV[:, :, lens_mt:]
    k_mt_V, k_s_V = kV[:, :, :lens_mt], kV[:, :, lens_mt:]
    v_mt_V, v_s_V = vV[:, :, :lens_mt], vV[:, :, lens_mt:]
    q_mt_I, q_s_I = qI[:, :, :lens_mt], qI[:, :, lens_mt:]
    k_mt_I, k_s_I = kI[:, :, :lens_mt], kI[:, :, lens_mt:]
    v_mt_I, v_s_I = vI[:, :, :lens_mt], vI[:, :, lens_mt:]
    k_mt = jnp.concatenate([k_mt_V, k_mt_I], axis=2)
    v_mt = jnp.concatenate([v_mt_V, v_mt_I], axis=2)
    x_mt_V = merge(sdpa(q_mt_V, k_mt_V, v_mt_V))
    x_mt_I = merge(sdpa(q_mt_I, k_mt_I, v_mt_I))
    x_s_V = merge(sdpa(q_s_V, jnp.concatenate([k_mt, k_s_V], axis=2),
                       jnp.concatenate([v_mt, v_s_V], axis=2)))
    x_s_I = merge(sdpa(q_s_I, jnp.concatenate([k_mt, k_s_I], axis=2),
                       jnp.concatenate([v_mt, v_s_I], axis=2)))
    x_V = jnp.concatenate([x_mt_V, x_s_V], axis=1)
    x_I = jnp.concatenate([x_mt_I, x_s_I], axis=1)
    xp = jnp.concatenate([x_V, x_I], axis=0) @ wp + params["b_proj"]
    x_vi = x_vi + xp
    attn_t2s = None
    if exe_ce:
        s = jnp.einsum('bhqd,bhkd->bhqk', jnp.concatenate([q_mt_V, q_mt_I], axis=2),
                       jnp.concatenate([k_s_V, k_s_I], axis=2)) * scale
        attn_t2s = jax.nn.softmax(s, axis=-1)
    x_v1, x_i1 = x_vi[:B], x_vi[B:]
    gv, gi, rv, ri = gi_v, gi_i, None, None
    if exe_ce:
        x_v1, x_i1, gv, gi, rv, ri = candidate_elimination(
            attn_t2s, x_v1, x_i1, keep_ratio, gi_v, gi_i, None)

    def mlp_ref(x):
        h = x @ w1 + params["b_fc1"]
        h = 0.5 * h * (1.0 + jax.lax.erf(h * 0.7071067811865476))
        return h @ w2 + params["b_fc2"]

    x_v_out = x_v1 + mlp_ref(ln(x_v1, params["ln2v_g"], params["ln2v_b"]))
    x_i_out = x_i1 + mlp_ref(ln(x_i1, params["ln2i_g"], params["ln2i_b"]))
    return x_v_out, x_i_out, gv, gi, rv, ri, attn_t2s


# ------------------------------------ main ------------------------------------

if __name__ == "__main__":
    B = 2
    num_heads = 2
    dim = 32
    t_h = t_w = 2
    s_h = s_w = 4
    lens_s = s_h * s_w                 # 16 search tokens per modality
    lens_mt = t_h * t_w * 2            # 8 template tokens (both modalities)
    N = lens_mt + lens_s               # 24

    key = jax.random.PRNGKey(0)
    k1, k2, kp = jax.random.split(key, 3)
    x_v = jax.random.normal(k1, (B, N, dim), jnp.float32)
    x_i = jax.random.normal(k2, (B, N, dim), jnp.float32)
    gi_v = jnp.tile(jnp.arange(lens_s, dtype=jnp.int32)[None, :], (B, 1))
    gi_i = jnp.tile(jnp.arange(lens_s, dtype=jnp.int32)[None, :], (B, 1))
    params = init_params(kp, dim, num_heads)

    fwd = jax.jit(ce_block_shared_forward,
                  static_argnames=("t_h", "t_w", "s_h", "s_w", "num_heads",
                                   "block_keep_ratio_search", "keep_ratio_search"))

    # ---- path 1: no candidate elimination (keep_ratio = 1.0), full numeric check ----
    outs_full = fwd(params, x_v, x_i, t_h=t_h, t_w=t_w, s_h=s_h, s_w=s_w,
                    global_index_search_v=gi_v, global_index_search_i=gi_i,
                    num_heads=num_heads, block_keep_ratio_search=1.0,
                    ce_template_mask=None, keep_ratio_search=None)
    jax.block_until_ready(outs_full[0])
    ref_full = reference_forward(params, x_v, x_i, t_h, t_w, gi_v, gi_i,
                                 num_heads, 1.0)
    assert outs_full[0].shape == (B, N, dim) and outs_full[1].shape == (B, N, dim)
    assert outs_full[6] is None
    err_v = float(jnp.max(jnp.abs(outs_full[0] - ref_full[0])))
    err_i = float(jnp.max(jnp.abs(outs_full[1] - ref_full[1])))
    assert err_v < 5e-2 and err_i < 5e-2, (err_v, err_i)

    # ---- path 2: candidate elimination active (keep_ratio = 0.5) ----
    keep_ratio = 0.5
    outs_ce = fwd(params, x_v, x_i, t_h=t_h, t_w=t_w, s_h=s_h, s_w=s_w,
                  global_index_search_v=gi_v, global_index_search_i=gi_i,
                  num_heads=num_heads, block_keep_ratio_search=keep_ratio,
                  ce_template_mask=None, keep_ratio_search=None)
    for o in outs_ce:
        if o is not None:
            jax.block_until_ready(o)
    ref_ce = reference_forward(params, x_v, x_i, t_h, t_w, gi_v, gi_i,
                               num_heads, keep_ratio)
    lens_keep = math.ceil(keep_ratio * lens_s)
    assert outs_ce[0].shape == (B, lens_mt + lens_keep, dim)
    assert outs_ce[1].shape == (B, lens_mt + lens_keep, dim)
    assert outs_ce[6].shape == (B, num_heads, 2 * lens_mt, 2 * lens_s)
    err_a = float(jnp.max(jnp.abs(outs_ce[6] - ref_ce[6])))
    assert err_a < 5e-2, err_a

    print("KERNEL_OK")
</pallas_src>

<mosaic_0001>
module attributes {stable_mosaic.version = 11 : i64} {
  func.func @_asym_attn_kernel(%arg0: i32, %arg1: i32, %arg2: memref<1x1x24x96xbf16, #tpu.memory_space<vmem>>, %arg3: memref<1x1x8x96xbf16, #tpu.memory_space<vmem>>, %arg4: memref<1x1x24x32xbf16, #tpu.memory_space<vmem>>) attributes {dimension_semantics = [#tpu.dimension_semantics<parallel>, #tpu.dimension_semantics<parallel>], iteration_bounds = array<i64: 2, 2>, scalar_prefetch = 0 : i64, scratch_operands = 0 : i64, tpu.core_type = #tpu.core_type<tc>, window_params = [{transform_indices = @transform_0, window_bounds = array<i64: 1, 1, 24, 96>}, {transform_indices = @transform_1, window_bounds = array<i64: 1, 1, 8, 96>}, {transform_indices = @transform_2, window_bounds = array<i64: 1, 1, 24, 32>}]} {
    %c0 = arith.constant 0 : index
    %c0_0 = arith.constant 0 : index
    %c0_1 = arith.constant 0 : index
    %c0_2 = arith.constant 0 : index
    %0 = vector.load %arg2[%c0, %c0_0, %c0_1, %c0_2] : memref<1x1x24x96xbf16, #tpu.memory_space<vmem>>, vector<1x1x24x96xbf16>
    %1 = vector.shape_cast %0 : vector<1x1x24x96xbf16> to vector<24x96xbf16>
    %c0_3 = arith.constant 0 : index
    %c0_4 = arith.constant 0 : index
    %c0_5 = arith.constant 0 : index
    %c0_6 = arith.constant 0 : index
    %2 = vector.load %arg3[%c0_3, %c0_4, %c0_5, %c0_6] : memref<1x1x8x96xbf16, #tpu.memory_space<vmem>>, vector<1x1x8x96xbf16>
    %3 = vector.shape_cast %2 : vector<1x1x8x96xbf16> to vector<8x96xbf16>
    %4 = vector.extract_strided_slice %1 {offsets = [0, 0], sizes = [24, 32], strides = [1, 1]} : vector<24x96xbf16> to vector<24x32xbf16>
    %5 = vector.extract_strided_slice %1 {offsets = [0, 32], sizes = [24, 32], strides = [1, 1]} : vector<24x96xbf16> to vector<24x32xbf16>
    %6 = vector.extract_strided_slice %1 {offsets = [0, 64], sizes = [24, 32], strides = [1, 1]} : vector<24x96xbf16> to vector<24x32xbf16>
    %7 = vector.extract_strided_slice %3 {offsets = [0, 32], sizes = [8, 32], strides = [1, 1]} : vector<8x96xbf16> to vector<8x32xbf16>
    %8 = vector.extract_strided_slice %3 {offsets = [0, 64], sizes = [8, 32], strides = [1, 1]} : vector<8x96xbf16> to vector<8x32xbf16>
    %9 = vector.extract_strided_slice %4 {offsets = [0, 0], sizes = [24, 16], strides = [1, 1]} : vector<24x32xbf16> to vector<24x16xbf16>
    %10 = vector.extract_strided_slice %5 {offsets = [0, 0], sizes = [24, 16], strides = [1, 1]} : vector<24x32xbf16> to vector<24x16xbf16>
    %11 = vector.extract_strided_slice %6 {offsets = [0, 0], sizes = [24, 16], strides = [1, 1]} : vector<24x32xbf16> to vector<24x16xbf16>
    %12 = vector.extract_strided_slice %9 {offsets = [0, 0], sizes = [8, 16], strides = [1, 1]} : vector<24x16xbf16> to vector<8x16xbf16>
    %13 = vector.extract_strided_slice %9 {offsets = [8, 0], sizes = [16, 16], strides = [1, 1]} : vector<24x16xbf16> to vector<16x16xbf16>
    %14 = vector.extract_strided_slice %10 {offsets = [0, 0], sizes = [8, 16], strides = [1, 1]} : vector<24x16xbf16> to vector<8x16xbf16>
    %15 = vector.extract_strided_slice %10 {offsets = [8, 0], sizes = [16, 16], strides = [1, 1]} : vector<24x16xbf16> to vector<16x16xbf16>
    %16 = vector.extract_strided_slice %11 {offsets = [0, 0], sizes = [8, 16], strides = [1, 1]} : vector<24x16xbf16> to vector<8x16xbf16>
    %17 = vector.extract_strided_slice %11 {offsets = [8, 0], sizes = [16, 16], strides = [1, 1]} : vector<24x16xbf16> to vector<16x16xbf16>
    %18 = vector.extract_strided_slice %7 {offsets = [0, 0], sizes = [8, 16], strides = [1, 1]} : vector<8x32xbf16> to vector<8x16xbf16>
    %19 = vector.extract_strided_slice %8 {offsets = [0, 0], sizes = [8, 16], strides = [1, 1]} : vector<8x32xbf16> to vector<8x16xbf16>
    "tpu.trace_start"() <{level = 10 : i32, message = "qd,kd->qk"}> : () -> ()
    %cst = arith.constant dense<0.000000e+00> : vector<8x8xf32>
    %20 = tpu.matmul %12, %14, %cst {dimension_numbers = #tpu.dot_dimension_numbers<[1], [1], [0], [0], [0, 0, 1, 0], [], []>} : vector<8x16xbf16>, vector<8x16xbf16>, vector<8x8xf32> -> vector<8x8xf32>
    "tpu.trace_stop"() : () -> ()
    %cst_7 = arith.constant dense<0xFF800000> : vector<8xf32>
    %21 = vector.multi_reduction <maximumf>, %20, %cst_7 [1] : vector<8x8xf32> to vector<8xf32>
    %22 = vector.shape_cast %21 : vector<8xf32> to vector<8x1xf32>
    %23 = vector.broadcast %22 : vector<8x1xf32> to vector<8x8xf32>
    %24 = arith.subf %20, %23 : vector<8x8xf32>
    %25 = math.exp %24 : vector<8x8xf32>
    %cst_8 = arith.constant dense<0.000000e+00> : vector<8xf32>
    %26 = vector.multi_reduction <add>, %25, %cst_8 [1] : vector<8x8xf32> to vector<8xf32>
    %27 = vector.shape_cast %26 : vector<8xf32> to vector<8x1xf32>
    %28 = tpu.reciprocal %27 {approx = true} : vector<8x1xf32> -> vector<8x1xf32>
    %29 = vector.broadcast %28 : vector<8x1xf32> to vector<8x8xf32>
    %30 = arith.mulf %25, %29 : vector<8x8xf32>
    %31 = arith.truncf %30 : vector<8x8xf32> to vector<8x8xbf16>
    %cst_9 = arith.constant dense<0.000000e+00> : vector<8x16xf32>
    %32 = tpu.matmul %31, %16, %cst_9 {dimension_numbers = #tpu.dot_dimension_numbers<[1], [0], [0], [1], [0, 0, 1, 1], [], []>} : vector<8x8xbf16>, vector<8x16xbf16>, vector<8x16xf32> -> vector<8x16xf32>
    %33 = tpu.concatenate %14, %18, %15 in 0 : vector<8x16xbf16>, vector<8x16xbf16>, vector<16x16xbf16> -> vector<32x16xbf16>
    %34 = tpu.concatenate %16, %19, %17 in 0 : vector<8x16xbf16>, vector<8x16xbf16>, vector<16x16xbf16> -> vector<32x16xbf16>
    "tpu.trace_start"() <{level = 10 : i32, message = "qd,kd->qk"}> : () -> ()
    %cst_10 = arith.constant dense<0.000000e+00> : vector<16x32xf32>
    %35 = tpu.matmul %13, %33, %cst_10 {dimension_numbers = #tpu.dot_dimension_numbers<[1], [1], [0], [0], [0, 0, 1, 0], [], []>} : vector<16x16xbf16>, vector<32x16xbf16>, vector<16x32xf32> -> vector<16x32xf32>
    "tpu.trace_stop"() : () -> ()
    %cst_11 = arith.constant dense<0xFF800000> : vector<16xf32>
    %36 = vector.multi_reduction <maximumf>, %35, %cst_11 [1] : vector<16x32xf32> to vector<16xf32>
    %37 = vector.shape_cast %36 : vector<16xf32> to vector<16x1xf32>
    %38 = vector.broadcast %37 : vector<16x1xf32> to vector<16x32xf32>
    %39 = arith.subf %35, %38 : vector<16x32xf32>
    %40 = math.exp %39 : vector<16x32xf32>
    %cst_12 = arith.constant dense<0.000000e+00> : vector<16xf32>
    %41 = vector.multi_reduction <add>, %40, %cst_12 [1] : vector<16x32xf32> to vector<16xf32>
    %42 = vector.shape_cast %41 : vector<16xf32> to vector<16x1xf32>
    %43 = tpu.reciprocal %42 {approx = true} : vector<16x1xf32> -> vector<16x1xf32>
    %44 = vector.broadcast %43 : vector<16x1xf32> to vector<16x32xf32>
    %45 = arith.mulf %40, %44 : vector<16x32xf32>
    %46 = arith.truncf %45 : vector<16x32xf32> to vector<16x32xbf16>
    %cst_13 = arith.constant dense<0.000000e+00> : vector<16x16xf32>
    %47 = tpu.matmul %46, %34, %cst_13 {dimension_numbers = #tpu.dot_dimension_numbers<[1], [0], [0], [1], [0, 0, 1, 1], [], []>} : vector<16x32xbf16>, vector<32x16xbf16>, vector<16x16xf32> -> vector<16x16xf32>
    %48 = tpu.concatenate %32, %47 in 0 : vector<8x16xf32>, vector<16x16xf32> -> vector<24x16xf32>
    %49 = arith.truncf %48 : vector<24x16xf32> to vector<24x16xbf16>
    %50 = vector.extract_strided_slice %4 {offsets = [0, 16], sizes = [24, 16], strides = [1, 1]} : vector<24x32xbf16> to vector<24x16xbf16>
    %51 = vector.extract_strided_slice %5 {offsets = [0, 16], sizes = [24, 16], strides = [1, 1]} : vector<24x32xbf16> to vector<24x16xbf16>
    %52 = vector.extract_strided_slice %6 {offsets = [0, 16], sizes = [24, 16], strides = [1, 1]} : vector<24x32xbf16> to vector<24x16xbf16>
    %53 = vector.extract_strided_slice %50 {offsets = [0, 0], sizes = [8, 16], strides = [1, 1]} : vector<24x16xbf16> to vector<8x16xbf16>
    %54 = vector.extract_strided_slice %50 {offsets = [8, 0], sizes = [16, 16], strides = [1, 1]} : vector<24x16xbf16> to vector<16x16xbf16>
    %55 = vector.extract_strided_slice %51 {offsets = [0, 0], sizes = [8, 16], strides = [1, 1]} : vector<24x16xbf16> to vector<8x16xbf16>
    %56 = vector.extract_strided_slice %51 {offsets = [8, 0], sizes = [16, 16], strides = [1, 1]} : vector<24x16xbf16> to vector<16x16xbf16>
    %57 = vector.extract_strided_slice %52 {offsets = [0, 0], sizes = [8, 16], strides = [1, 1]} : vector<24x16xbf16> to vector<8x16xbf16>
    %58 = vector.extract_strided_slice %52 {offsets = [8, 0], sizes = [16, 16], strides = [1, 1]} : vector<24x16xbf16> to vector<16x16xbf16>
    %59 = vector.extract_strided_slice %7 {offsets = [0, 16], sizes = [8, 16], strides = [1, 1]} : vector<8x32xbf16> to vector<8x16xbf16>
    %60 = vector.extract_strided_slice %8 {offsets = [0, 16], sizes = [8, 16], strides = [1, 1]} : vector<8x32xbf16> to vector<8x16xbf16>
    "tpu.trace_start"() <{level = 10 : i32, message = "qd,kd->qk"}> : () -> ()
    %cst_14 = arith.constant dense<0.000000e+00> : vector<8x8xf32>
    %61 = tpu.matmul %53, %55, %cst_14 {dimension_numbers = #tpu.dot_dimension_numbers<[1], [1], [0], [0], [0, 0, 1, 0], [], []>} : vector<8x16xbf16>, vector<8x16xbf16>, vector<8x8xf32> -> vector<8x8xf32>
    "tpu.trace_stop"() : () -> ()
    %cst_15 = arith.constant dense<0xFF800000> : vector<8xf32>
    %62 = vector.multi_reduction <maximumf>, %61, %cst_15 [1] : vector<8x8xf32> to vector<8xf32>
    %63 = vector.shape_cast %62 : vector<8xf32> to vector<8x1xf32>
    %64 = vector.broadcast %63 : vector<8x1xf32> to vector<8x8xf32>
    %65 = arith.subf %61, %64 : vector<8x8xf32>
    %66 = math.exp %65 : vector<8x8xf32>
    %cst_16 = arith.constant dense<0.000000e+00> : vector<8xf32>
    %67 = vector.multi_reduction <add>, %66, %cst_16 [1] : vector<8x8xf32> to vector<8xf32>
    %68 = vector.shape_cast %67 : vector<8xf32> to vector<8x1xf32>
    %69 = tpu.reciprocal %68 {approx = true} : vector<8x1xf32> -> vector<8x1xf32>
    %70 = vector.broadcast %69 : vector<8x1xf32> to vector<8x8xf32>
    %71 = arith.mulf %66, %70 : vector<8x8xf32>
    %72 = arith.truncf %71 : vector<8x8xf32> to vector<8x8xbf16>
    %cst_17 = arith.constant dense<0.000000e+00> : vector<8x16xf32>
    %73 = tpu.matmul %72, %57, %cst_17 {dimension_numbers = #tpu.dot_dimension_numbers<[1], [0], [0], [1], [0, 0, 1, 1], [], []>} : vector<8x8xbf16>, vector<8x16xbf16>, vector<8x16xf32> -> vector<8x16xf32>
    %74 = tpu.concatenate %55, %59, %56 in 0 : vector<8x16xbf16>, vector<8x16xbf16>, vector<16x16xbf16> -> vector<32x16xbf16>
    %75 = tpu.concatenate %57, %60, %58 in 0 : vector<8x16xbf16>, vector<8x16xbf16>, vector<16x16xbf16> -> vector<32x16xbf16>
    "tpu.trace_start"() <{level = 10 : i32, message = "qd,kd->qk"}> : () -> ()
    %cst_18 = arith.constant dense<0.000000e+00> : vector<16x32xf32>
    %76 = tpu.matmul %54, %74, %cst_18 {dimension_numbers = #tpu.dot_dimension_numbers<[1], [1], [0], [0], [0, 0, 1, 0], [], []>} : vector<16x16xbf16>, vector<32x16xbf16>, vector<16x32xf32> -> vector<16x32xf32>
    "tpu.trace_stop"() : () -> ()
    %cst_19 = arith.constant dense<0xFF800000> : vector<16xf32>
    %77 = vector.multi_reduction <maximumf>, %76, %cst_19 [1] : vector<16x32xf32> to vector<16xf32>
    %78 = vector.shape_cast %77 : vector<16xf32> to vector<16x1xf32>
    %79 = vector.broadcast %78 : vector<16x1xf32> to vector<16x32xf32>
    %80 = arith.subf %76, %79 : vector<16x32xf32>
    %81 = math.exp %80 : vector<16x32xf32>
    %cst_20 = arith.constant dense<0.000000e+00> : vector<16xf32>
    %82 = vector.multi_reduction <add>, %81, %cst_20 [1] : vector<16x32xf32> to vector<16xf32>
    %83 = vector.shape_cast %82 : vector<16xf32> to vector<16x1xf32>
    %84 = tpu.reciprocal %83 {approx = true} : vector<16x1xf32> -> vector<16x1xf32>
    %85 = vector.broadcast %84 : vector<16x1xf32> to vector<16x32xf32>
    %86 = arith.mulf %81, %85 : vector<16x32xf32>
    %87 = arith.truncf %86 : vector<16x32xf32> to vector<16x32xbf16>
    %cst_21 = arith.constant dense<0.000000e+00> : vector<16x16xf32>
    %88 = tpu.matmul %87, %75, %cst_21 {dimension_numbers = #tpu.dot_dimension_numbers<[1], [0], [0], [1], [0, 0, 1, 1], [], []>} : vector<16x32xbf16>, vector<32x16xbf16>, vector<16x16xf32> -> vector<16x16xf32>
    %89 = tpu.concatenate %73, %88 in 0 : vector<8x16xf32>, vector<16x16xf32> -> vector<24x16xf32>
    %90 = arith.truncf %89 : vector<24x16xf32> to vector<24x16xbf16>
    %91 = tpu.concatenate %49, %90 in 1 : vector<24x16xbf16>, vector<24x16xbf16> -> vector<24x32xbf16>
    %c0_22 = arith.constant 0 : index
    %c0_23 = arith.constant 0 : index
    %c0_24 = arith.constant 0 : index
    %c0_25 = arith.constant 0 : index
    %92 = vector.load %arg4[%c0_22, %c0_23, %c0_24, %c0_25] : memref<1x1x24x32xbf16, #tpu.memory_space<vmem>>, vector<1x1x24x32xbf16>
    %93 = vector.shape_cast %92 : vector<1x1x24x32xbf16> to vector<24x32xbf16>
    %94 = vector.shape_cast %91 : vector<24x32xbf16> to vector<1x1x24x32xbf16>
    tpu.vector_store %arg4[%c0_22, %c0_23, %c0_24, %c0_25], %94 {strides = array<i32>} : memref<1x1x24x32xbf16, #tpu.memory_space<vmem>>, vector<1x1x24x32xbf16>,
    return
  }
  func.func @transform_0(%arg0: i32, %arg1: i32) -> (i32, i32, i32, i32) {
    %c0_i32 = arith.constant 0 : i32
    %c0_i32_0 = arith.constant 0 : i32
    %c0_i32_1 = arith.constant 0 : i32
    return %arg0, %arg1, %c0_i32, %c0_i32_0 : i32, i32, i32, i32
  }
  func.func @transform_1(%arg0: i32, %arg1: i32) -> (i32, i32, i32, i32) {
    %c1_i32 = arith.constant 1 : i32
    %0 = arith.subi %c1_i32, %arg0 : i32
    %c0_i32 = arith.constant 0 : i32
    %c0_i32_0 = arith.constant 0 : i32
    %c0_i32_1 = arith.constant 0 : i32
    return %0, %arg1, %c0_i32, %c0_i32_0 : i32, i32, i32, i32
  }
  func.func @transform_2(%arg0: i32, %arg1: i32) -> (i32, i32, i32, i32) {
    %c0_i32 = arith.constant 0 : i32
    %c0_i32_0 = arith.constant 0 : i32
    %c0_i32_1 = arith.constant 0 : i32
    return %arg0, %arg1, %c0_i32, %c0_i32_0 : i32, i32, i32, i32
  }
}

module attributes {stable_mosaic.version = 11 : i64} {
  func.func @_ln_linear_kernel(%arg0: i32, %arg1: i32, %arg2: memref<1x48x32xf32, #tpu.memory_space<vmem>>, %arg3: memref<1x1x32xf32, #tpu.memory_space<vmem>>, %arg4: memref<1x1x32xf32, #tpu.memory_space<vmem>>, %arg5: memref<32x96xbf16, #tpu.memory_space<vmem>>, %arg6: memref<1x96xf32, #tpu.memory_space<vmem>>, %arg7: memref<1x48x96xbf16, #tpu.memory_space<vmem>>) attributes {dimension_semantics = [#tpu.dimension_semantics<parallel>, #tpu.dimension_semantics<parallel>], iteration_bounds = array<i64: 2, 1>, scalar_prefetch = 0 : i64, scratch_operands = 0 : i64, tpu.core_type = #tpu.core_type<tc>, window_params = [{transform_indices = @transform_0, window_bounds = array<i64: 1, 48, 32>}, {transform_indices = @transform_1, window_bounds = array<i64: 1, 1, 32>}, {transform_indices = @transform_2, window_bounds = array<i64: 1, 1, 32>}, {pipeline_mode = #tpu.pipeline_mode<synchronous>, transform_indices = @transform_3, window_bounds = array<i64: 32, 96>}, {pipeline_mode = #tpu.pipeline_mode<synchronous>, transform_indices = @transform_4, window_bounds = array<i64: 1, 96>}, {transform_indices = @transform_5, window_bounds = array<i64: 1, 48, 96>}]} {
    %c0 = arith.constant 0 : index
    %c0_0 = arith.constant 0 : index
    %c0_1 = arith.constant 0 : index
    %0 = vector.load %arg2[%c0, %c0_0, %c0_1] : memref<1x48x32xf32, #tpu.memory_space<vmem>>, vector<1x48x32xf32>
    %1 = vector.shape_cast %0 : vector<1x48x32xf32> to vector<48x32xf32>
    %cst = arith.constant dense<0.000000e+00> : vector<48xf32>
    %2 = vector.multi_reduction <add>, %1, %cst [1] : vector<48x32xf32> to vector<48xf32>
    %3 = vector.shape_cast %2 : vector<48xf32> to vector<48x1xf32>
    %cst_2 = arith.constant 3.200000e+01 : f32
    %4 = vector.broadcast %cst_2 : f32 to vector<48x1xf32>
    %5 = arith.divf %3, %4 : vector<48x1xf32>
    %6 = vector.broadcast %5 : vector<48x1xf32> to vector<48x32xf32>
    %7 = arith.subf %1, %6 : vector<48x32xf32>
    %8 = arith.mulf %7, %7 : vector<48x32xf32>
    %cst_3 = arith.constant dense<0.000000e+00> : vector<48xf32>
    %9 = vector.multi_reduction <add>, %8, %cst_3 [1] : vector<48x32xf32> to vector<48xf32>
    %10 = vector.shape_cast %9 : vector<48xf32> to vector<48x1xf32>
    %cst_4 = arith.constant 3.200000e+01 : f32
    %11 = vector.broadcast %cst_4 : f32 to vector<48x1xf32>
    %12 = arith.divf %10, %11 : vector<48x1xf32>
    %cst_5 = arith.constant 9.99999974E-6 : f32
    %13 = vector.broadcast %cst_5 : f32 to vector<48x1xf32>
    %14 = arith.addf %12, %13 : vector<48x1xf32>
    %15 = math.rsqrt %14 : vector<48x1xf32>
    %16 = vector.broadcast %15 : vector<48x1xf32> to vector<48x32xf32>
    %17 = arith.mulf %7, %16 : vector<48x32xf32>
    %c0_6 = arith.constant 0 : index
    %c0_7 = arith.constant 0 : index
    %c0_8 = arith.constant 0 : index
    %18 = vector.load %arg3[%c0_6, %c0_7, %c0_8] : memref<1x1x32xf32, #tpu.memory_space<vmem>>, vector<1x1x32xf32>
    %19 = vector.shape_cast %18 : vector<1x1x32xf32> to vector<1x32xf32>
    %20 = vector.broadcast %19 : vector<1x32xf32> to vector<48x32xf32>
    %21 = arith.mulf %17, %20 : vector<48x32xf32>
    %c0_9 = arith.constant 0 : index
    %c0_10 = arith.constant 0 : index
    %c0_11 = arith.constant 0 : index
    %22 = vector.load %arg4[%c0_9, %c0_10, %c0_11] : memref<1x1x32xf32, #tpu.memory_space<vmem>>, vector<1x1x32xf32>
    %23 = vector.shape_cast %22 : vector<1x1x32xf32> to vector<1x32xf32>
    %24 = vector.broadcast %23 : vector<1x32xf32> to vector<48x32xf32>
    %25 = arith.addf %21, %24 : vector<48x32xf32>
    %26 = arith.truncf %25 : vector<48x32xf32> to vector<48x32xbf16>
    %c0_12 = arith.constant 0 : index
    %c0_13 = arith.constant 0 : index
    %27 = vector.load %arg5[%c0_12, %c0_13] : memref<32x96xbf16, #tpu.memory_space<vmem>>, vector<32x96xbf16>
    %cst_14 = arith.constant dense<0.000000e+00> : vector<48x96xf32>
    %28 = tpu.matmul %26, %27, %cst_14 {dimension_numbers = #tpu.dot_dimension_numbers<[1], [0], [0], [1], [0, 0, 1, 1], [], []>} : vector<48x32xbf16>, vector<32x96xbf16>, vector<48x96xf32> -> vector<48x96xf32>
    %c0_15 = arith.constant 0 : index
    %c0_16 = arith.constant 0 : index
    %29 = vector.load %arg6[%c0_15, %c0_16] : memref<1x96xf32, #tpu.memory_space<vmem>>, vector<1x96xf32>
    %30 = vector.broadcast %29 : vector<1x96xf32> to vector<48x96xf32>
    %31 = arith.addf %28, %30 : vector<48x96xf32>
    %32 = arith.truncf %31 : vector<48x96xf32> to vector<48x96xbf16>
    %c0_17 = arith.constant 0 : index
    %c0_18 = arith.constant 0 : index
    %c0_19 = arith.constant 0 : index
    %33 = vector.load %arg7[%c0_17, %c0_18, %c0_19] : memref<1x48x96xbf16, #tpu.memory_space<vmem>>, vector<1x48x96xbf16>
    %34 = vector.shape_cast %33 : vector<1x48x96xbf16> to vector<48x96xbf16>
    %35 = vector.shape_cast %32 : vector<48x96xbf16> to vector<1x48x96xbf16>
    tpu.vector_store %arg7[%c0_17, %c0_18, %c0_19], %35 {strides = array<i32>} : memref<1x48x96xbf16, #tpu.memory_space<vmem>>, vector<1x48x96xbf16>,
    return
  }
  func.func @transform_0(%arg0: i32, %arg1: i32) -> (i32, i32, i32) {
    %c0_i32 = arith.constant 0 : i32
    %c0_i32_0 = arith.constant 0 : i32
    return %arg0, %arg1, %c0_i32 : i32, i32, i32
  }
  func.func @transform_1(%arg0: i32, %arg1: i32) -> (i32, i32, i32) {
    %c0_i32 = arith.constant 0 : i32
    %c0_i32_0 = arith.constant 0 : i32
    %c0_i32_1 = arith.constant 0 : i32
    return %arg0, %c0_i32, %c0_i32_0 : i32, i32, i32
  }
  func.func @transform_2(%arg0: i32, %arg1: i32) -> (i32, i32, i32) {
    %c0_i32 = arith.constant 0 : i32
    %c0_i32_0 = arith.constant 0 : i32
    %c0_i32_1 = arith.constant 0 : i32
    return %arg0, %c0_i32, %c0_i32_0 : i32, i32, i32
  }
  func.func @transform_3(%arg0: i32, %arg1: i32) -> (i32, i32) {
    %c0_i32 = arith.constant 0 : i32
    %c0_i32_0 = arith.constant 0 : i32
    %c0_i32_1 = arith.constant 0 : i32
    return %c0_i32, %c0_i32_0 : i32, i32
  }
  func.func @transform_4(%arg0: i32, %arg1: i32) -> (i32, i32) {
    %c0_i32 = arith.constant 0 : i32
    %c0_i32_0 = arith.constant 0 : i32
    %c0_i32_1 = arith.constant 0 : i32
    return %c0_i32, %c0_i32_0 : i32, i32
  }
  func.func @transform_5(%arg0: i32, %arg1: i32) -> (i32, i32, i32) {
    %c0_i32 = arith.constant 0 : i32
    %c0_i32_0 = arith.constant 0 : i32
    return %arg0, %arg1, %c0_i32 : i32, i32, i32
  }
}

module attributes {stable_mosaic.version = 11 : i64} {
  func.func @_proj_residual_kernel(%arg0: i32, %arg1: i32, %arg2: memref<1x48x32xbf16, #tpu.memory_space<vmem>>, %arg3: memref<1x48x32xf32, #tpu.memory_space<vmem>>, %arg4: memref<32x32xbf16, #tpu.memory_space<vmem>>, %arg5: memref<1x32xf32, #tpu.memory_space<vmem>>, %arg6: memref<1x48x32xf32, #tpu.memory_space<vmem>>) attributes {dimension_semantics = [#tpu.dimension_semantics<parallel>, #tpu.dimension_semantics<parallel>], iteration_bounds = array<i64: 2, 1>, scalar_prefetch = 0 : i64, scratch_operands = 0 : i64, tpu.core_type = #tpu.core_type<tc>, window_params = [{transform_indices = @transform_0, window_bounds = array<i64: 1, 48, 32>}, {transform_indices = @transform_1, window_bounds = array<i64: 1, 48, 32>}, {pipeline_mode = #tpu.pipeline_mode<synchronous>, transform_indices = @transform_2, window_bounds = array<i64: 32, 32>}, {pipeline_mode = #tpu.pipeline_mode<synchronous>, transform_indices = @transform_3, window_bounds = array<i64: 1, 32>}, {transform_indices = @transform_4, window_bounds = array<i64: 1, 48, 32>}]} {
    %c0 = arith.constant 0 : index
    %c0_0 = arith.constant 0 : index
    %c0_1 = arith.constant 0 : index
    %0 = vector.load %arg2[%c0, %c0_0, %c0_1] : memref<1x48x32xbf16, #tpu.memory_space<vmem>>, vector<1x48x32xbf16>
    %1 = vector.shape_cast %0 : vector<1x48x32xbf16> to vector<48x32xbf16>
    %c0_2 = arith.constant 0 : index
    %c0_3 = arith.constant 0 : index
    %2 = vector.load %arg4[%c0_2, %c0_3] : memref<32x32xbf16, #tpu.memory_space<vmem>>, vector<32x32xbf16>
    %cst = arith.constant dense<0.000000e+00> : vector<48x32xf32>
    %3 = tpu.matmul %1, %2, %cst {dimension_numbers = #tpu.dot_dimension_numbers<[1], [0], [0], [1], [0, 0, 1, 1], [], []>} : vector<48x32xbf16>, vector<32x32xbf16>, vector<48x32xf32> -> vector<48x32xf32>
    %c0_4 = arith.constant 0 : index
    %c0_5 = arith.constant 0 : index
    %c0_6 = arith.constant 0 : index
    %4 = vector.load %arg3[%c0_4, %c0_5, %c0_6] : memref<1x48x32xf32, #tpu.memory_space<vmem>>, vector<1x48x32xf32>
    %5 = vector.shape_cast %4 : vector<1x48x32xf32> to vector<48x32xf32>
    %6 = arith.addf %5, %3 : vector<48x32xf32>
    %c0_7 = arith.constant 0 : index
    %c0_8 = arith.constant 0 : index
    %7 = vector.load %arg5[%c0_7, %c0_8] : memref<1x32xf32, #tpu.memory_space<vmem>>, vector<1x32xf32>
    %8 = vector.broadcast %7 : vector<1x32xf32> to vector<48x32xf32>
    %9 = arith.addf %6, %8 : vector<48x32xf32>
    %c0_9 = arith.constant 0 : index
    %c0_10 = arith.constant 0 : index
    %c0_11 = arith.constant 0 : index
    %10 = vector.load %arg6[%c0_9, %c0_10, %c0_11] : memref<1x48x32xf32, #tpu.memory_space<vmem>>, vector<1x48x32xf32>
    %11 = vector.shape_cast %10 : vector<1x48x32xf32> to vector<48x32xf32>
    %12 = vector.shape_cast %9 : vector<48x32xf32> to vector<1x48x32xf32>
    tpu.vector_store %arg6[%c0_9, %c0_10, %c0_11], %12 {strides = array<i32>} : memref<1x48x32xf32, #tpu.memory_space<vmem>>, vector<1x48x32xf32>,
    return
  }
  func.func @transform_0(%arg0: i32, %arg1: i32) -> (i32, i32, i32) {
    %c0_i32 = arith.constant 0 : i32
    %c0_i32_0 = arith.constant 0 : i32
    return %arg0, %arg1, %c0_i32 : i32, i32, i32
  }
  func.func @transform_1(%arg0: i32, %arg1: i32) -> (i32, i32, i32) {
    %c0_i32 = arith.constant 0 : i32
    %c0_i32_0 = arith.constant 0 : i32
    return %arg0, %arg1, %c0_i32 : i32, i32, i32
  }
  func.func @transform_2(%arg0: i32, %arg1: i32) -> (i32, i32) {
    %c0_i32 = arith.constant 0 : i32
    %c0_i32_0 = arith.constant 0 : i32
    %c0_i32_1 = arith.constant 0 : i32
    return %c0_i32, %c0_i32_0 : i32, i32
  }
  func.func @transform_3(%arg0: i32, %arg1: i32) -> (i32, i32) {
    %c0_i32 = arith.constant 0 : i32
    %c0_i32_0 = arith.constant 0 : i32
    %c0_i32_1 = arith.constant 0 : i32
    return %c0_i32, %c0_i32_0 : i32, i32
  }
  func.func @transform_4(%arg0: i32, %arg1: i32) -> (i32, i32, i32) {
    %c0_i32 = arith.constant 0 : i32
    %c0_i32_0 = arith.constant 0 : i32
    return %arg0, %arg1, %c0_i32 : i32, i32, i32
  }
}

module attributes {stable_mosaic.version = 11 : i64} {
  func.func @_ln_mlp_residual_kernel(%arg0: i32, %arg1: i32, %arg2: memref<1x48x32xf32, #tpu.memory_space<vmem>>, %arg3: memref<1x1x32xf32, #tpu.memory_space<vmem>>, %arg4: memref<1x1x32xf32, #tpu.memory_space<vmem>>, %arg5: memref<32x128xbf16, #tpu.memory_space<vmem>>, %arg6: memref<1x128xf32, #tpu.memory_space<vmem>>, %arg7: memref<128x32xbf16, #tpu.memory_space<vmem>>, %arg8: memref<1x32xf32, #tpu.memory_space<vmem>>, %arg9: memref<1x48x32xf32, #tpu.memory_space<vmem>>) attributes {dimension_semantics = [#tpu.dimension_semantics<parallel>, #tpu.dimension_semantics<parallel>], iteration_bounds = array<i64: 2, 1>, scalar_prefetch = 0 : i64, scratch_operands = 0 : i64, tpu.core_type = #tpu.core_type<tc>, window_params = [{transform_indices = @transform_0, window_bounds = array<i64: 1, 48, 32>}, {transform_indices = @transform_1, window_bounds = array<i64: 1, 1, 32>}, {transform_indices = @transform_2, window_bounds = array<i64: 1, 1, 32>}, {pipeline_mode = #tpu.pipeline_mode<synchronous>, transform_indices = @transform_3, window_bounds = array<i64: 32, 128>}, {pipeline_mode = #tpu.pipeline_mode<synchronous>, transform_indices = @transform_4, window_bounds = array<i64: 1, 128>}, {pipeline_mode = #tpu.pipeline_mode<synchronous>, transform_indices = @transform_5, window_bounds = array<i64: 128, 32>}, {pipeline_mode = #tpu.pipeline_mode<synchronous>, transform_indices = @transform_6, window_bounds = array<i64: 1, 32>}, {transform_indices = @transform_7, window_bounds = array<i64: 1, 48, 32>}]} {
    %c0 = arith.constant 0 : index
    %c0_0 = arith.constant 0 : index
    %c0_1 = arith.constant 0 : index
    %0 = vector.load %arg2[%c0, %c0_0, %c0_1] : memref<1x48x32xf32, #tpu.memory_space<vmem>>, vector<1x48x32xf32>
    %1 = vector.shape_cast %0 : vector<1x48x32xf32> to vector<48x32xf32>
    %cst = arith.constant dense<0.000000e+00> : vector<48xf32>
    %2 = vector.multi_reduction <add>, %1, %cst [1] : vector<48x32xf32> to vector<48xf32>
    %3 = vector.shape_cast %2 : vector<48xf32> to vector<48x1xf32>
    %cst_2 = arith.constant 3.200000e+01 : f32
    %4 = vector.broadcast %cst_2 : f32 to vector<48x1xf32>
    %5 = arith.divf %3, %4 : vector<48x1xf32>
    %6 = vector.broadcast %5 : vector<48x1xf32> to vector<48x32xf32>
    %7 = arith.subf %1, %6 : vector<48x32xf32>
    %8 = arith.mulf %7, %7 : vector<48x32xf32>
    %cst_3 = arith.constant dense<0.000000e+00> : vector<48xf32>
    %9 = vector.multi_reduction <add>, %8, %cst_3 [1] : vector<48x32xf32> to vector<48xf32>
    %10 = vector.shape_cast %9 : vector<48xf32> to vector<48x1xf32>
    %cst_4 = arith.constant 3.200000e+01 : f32
    %11 = vector.broadcast %cst_4 : f32 to vector<48x1xf32>
    %12 = arith.divf %10, %11 : vector<48x1xf32>
    %cst_5 = arith.constant 9.99999974E-6 : f32
    %13 = vector.broadcast %cst_5 : f32 to vector<48x1xf32>
    %14 = arith.addf %12, %13 : vector<48x1xf32>
    %15 = math.rsqrt %14 : vector<48x1xf32>
    %16 = vector.broadcast %15 : vector<48x1xf32> to vector<48x32xf32>
    %17 = arith.mulf %7, %16 : vector<48x32xf32>
    %c0_6 = arith.constant 0 : index
    %c0_7 = arith.constant 0 : index
    %c0_8 = arith.constant 0 : index
    %18 = vector.load %arg3[%c0_6, %c0_7, %c0_8] : memref<1x1x32xf32, #tpu.memory_space<vmem>>, vector<1x1x32xf32>
    %19 = vector.shape_cast %18 : vector<1x1x32xf32> to vector<1x32xf32>
    %20 = vector.broadcast %19 : vector<1x32xf32> to vector<48x32xf32>
    %21 = arith.mulf %17, %20 : vector<48x32xf32>
    %c0_9 = arith.constant 0 : index
    %c0_10 = arith.constant 0 : index
    %c0_11 = arith.constant 0 : index
    %22 = vector.load %arg4[%c0_9, %c0_10, %c0_11] : memref<1x1x32xf32, #tpu.memory_space<vmem>>, vector<1x1x32xf32>
    %23 = vector.shape_cast %22 : vector<1x1x32xf32> to vector<1x32xf32>
    %24 = vector.broadcast %23 : vector<1x32xf32> to vector<48x32xf32>
    %25 = arith.addf %21, %24 : vector<48x32xf32>
    %26 = arith.truncf %25 : vector<48x32xf32> to vector<48x32xbf16>
    %c0_12 = arith.constant 0 : index
    %c0_13 = arith.constant 0 : index
    %27 = vector.load %arg5[%c0_12, %c0_13] : memref<32x128xbf16, #tpu.memory_space<vmem>>, vector<32x128xbf16>
    %cst_14 = arith.constant dense<0.000000e+00> : vector<48x128xf32>
    %28 = tpu.matmul %26, %27, %cst_14 {dimension_numbers = #tpu.dot_dimension_numbers<[1], [0], [0], [1], [0, 0, 1, 1], [], []>} : vector<48x32xbf16>, vector<32x128xbf16>, vector<48x128xf32> -> vector<48x128xf32>
    %c0_15 = arith.constant 0 : index
    %c0_16 = arith.constant 0 : index
    %29 = vector.load %arg6[%c0_15, %c0_16] : memref<1x128xf32, #tpu.memory_space<vmem>>, vector<1x128xf32>
    %30 = vector.broadcast %29 : vector<1x128xf32> to vector<48x128xf32>
    %31 = arith.addf %28, %30 : vector<48x128xf32>
    %cst_17 = arith.constant 5.000000e-01 : f32
    %32 = vector.broadcast %cst_17 : f32 to vector<48x128xf32>
    %33 = arith.mulf %32, %31 : vector<48x128xf32>
    %cst_18 = arith.constant 0.707106769 : f32
    %34 = vector.broadcast %cst_18 : f32 to vector<48x128xf32>
    %35 = arith.mulf %31, %34 : vector<48x128xf32>
    %36 = math.erf %35 : vector<48x128xf32>
    %cst_19 = arith.constant 1.000000e+00 : f32
    %37 = vector.broadcast %cst_19 : f32 to vector<48x128xf32>
    %38 = arith.addf %37, %36 : vector<48x128xf32>
    %39 = arith.mulf %33, %38 : vector<48x128xf32>
    %40 = arith.truncf %39 : vector<48x128xf32> to vector<48x128xbf16>
    %c0_20 = arith.constant 0 : index
    %c0_21 = arith.constant 0 : index
    %41 = vector.load %arg7[%c0_20, %c0_21] : memref<128x32xbf16, #tpu.memory_space<vmem>>, vector<128x32xbf16>
    %cst_22 = arith.constant dense<0.000000e+00> : vector<48x32xf32>
    %42 = tpu.matmul %40, %41, %cst_22 {dimension_numbers = #tpu.dot_dimension_numbers<[1], [0], [0], [1], [0, 0, 1, 1], [], []>} : vector<48x128xbf16>, vector<128x32xbf16>, vector<48x32xf32> -> vector<48x32xf32>
    %c0_23 = arith.constant 0 : index
    %c0_24 = arith.constant 0 : index
    %43 = vector.load %arg8[%c0_23, %c0_24] : memref<1x32xf32, #tpu.memory_space<vmem>>, vector<1x32xf32>
    %44 = vector.broadcast %43 : vector<1x32xf32> to vector<48x32xf32>
    %45 = arith.addf %42, %44 : vector<48x32xf32>
    %46 = arith.addf %1, %45 : vector<48x32xf32>
    %c0_25 = arith.constant 0 : index
    %c0_26 = arith.constant 0 : index
    %c0_27 = arith.constant 0 : index
    %47 = vector.load %arg9[%c0_25, %c0_26, %c0_27] : memref<1x48x32xf32, #tpu.memory_space<vmem>>, vector<1x48x32xf32>
    %48 = vector.shape_cast %47 : vector<1x48x32xf32> to vector<48x32xf32>
    %49 = vector.shape_cast %46 : vector<48x32xf32> to vector<1x48x32xf32>
    tpu.vector_store %arg9[%c0_25, %c0_26, %c0_27], %49 {strides = array<i32>} : memref<1x48x32xf32, #tpu.memory_space<vmem>>, vector<1x48x32xf32>,
    return
  }
  func.func @transform_0(%arg0: i32, %arg1: i32) -> (i32, i32, i32) {
    %c0_i32 = arith.constant 0 : i32
    %c0_i32_0 = arith.constant 0 : i32
    return %arg0, %arg1, %c0_i32 : i32, i32, i32
  }
  func.func @transform_1(%arg0: i32, %arg1: i32) -> (i32, i32, i32) {
    %c0_i32 = arith.constant 0 : i32
    %c0_i32_0 = arith.constant 0 : i32
    %c0_i32_1 = arith.constant 0 : i32
    return %arg0, %c0_i32, %c0_i32_0 : i32, i32, i32
  }
  func.func @transform_2(%arg0: i32, %arg1: i32) -> (i32, i32, i32) {
    %c0_i32 = arith.constant 0 : i32
    %c0_i32_0 = arith.constant 0 : i32
    %c0_i32_1 = arith.constant 0 : i32
    return %arg0, %c0_i32, %c0_i32_0 : i32, i32, i32
  }
  func.func @transform_3(%arg0: i32, %arg1: i32) -> (i32, i32) {
    %c0_i32 = arith.constant 0 : i32
    %c0_i32_0 = arith.constant 0 : i32
    %c0_i32_1 = arith.constant 0 : i32
    return %c0_i32, %c0_i32_0 : i32, i32
  }
  func.func @transform_4(%arg0: i32, %arg1: i32) -> (i32, i32) {
    %c0_i32 = arith.constant 0 : i32
    %c0_i32_0 = arith.constant 0 : i32
    %c0_i32_1 = arith.constant 0 : i32
    return %c0_i32, %c0_i32_0 : i32, i32
  }
  func.func @transform_5(%arg0: i32, %arg1: i32) -> (i32, i32) {
    %c0_i32 = arith.constant 0 : i32
    %c0_i32_0 = arith.constant 0 : i32
    %c0_i32_1 = arith.constant 0 : i32
    return %c0_i32, %c0_i32_0 : i32, i32
  }
  func.func @transform_6(%arg0: i32, %arg1: i32) -> (i32, i32) {
    %c0_i32 = arith.constant 0 : i32
    %c0_i32_0 = arith.constant 0 : i32
    %c0_i32_1 = arith.constant 0 : i32
    return %c0_i32, %c0_i32_0 : i32, i32
  }
  func.func @transform_7(%arg0: i32, %arg1: i32) -> (i32, i32, i32) {
    %c0_i32 = arith.constant 0 : i32
    %c0_i32_0 = arith.constant 0 : i32
    return %arg0, %arg1, %c0_i32 : i32, i32, i32
  }
}

</mosaic_0001>

<bundles_post_ra>
// kernel: mul.9
= control target key start
LH: loop header
LB: loop body
LE: loop exit
PB: predicated region body
PF: predicated region fallthrough
CT: control target
= control target key end

     0   :  { %s34_s0 = inlined_call_operand.vmem [shape: f32[1,96], index: 0, kind: input, shape index: {}]   ;;  %s35_s1 = inlined_call_operand.vmem [shape: f32[1,96], index: 1, kind: input, shape index: {}]   ;;  %s36_s2 = inlined_call_operand.vmem [shape: f32[1,96], index: 2, kind: output, shape index: {}]  }
   0x1   :  { %v3_v0 = vld [vmem:[%s34_s0] sm:$0x1] }
   0x2   :  { %v4_v1 = vld [vmem:[%s35_s1] sm:$0x1] }
   0x3   :  { %v7_v2 = vmul.f32 %v4_v1, %v3_v0 }
   0x5   :  { %9 = vst [vmem:[%s36_s2] sm:$0x1] %v7_v2 }

// kernel: ce_block_shared_forward.6
= control target key start
LH: loop header
LB: loop body
LE: loop exit
PB: predicated region body
PF: predicated region fallthrough
CT: control target
= control target key end

     0   :  { %s642_s15 = smov 0   ;;  %s644_s16 = smov 0   ;;  %s696_s0 = inlined_call_operand.vmem [shape: bf16[2,48,32], index: 0, kind: input, shape index: {}]   ;;  %s697_s1 = inlined_call_operand.vmem [shape: f32[2,48,32], index: 1, kind: input, shape index: {}, may-alias: {1,4}]   ;;  %s698_s2 = inlined_call_operand.vmem [shape: bf16[32,32], index: 2, kind: input, shape index: {}]   ;;  %s699_s3 = inlined_call_operand.vmem [shape: f32[1,32], index: 3, kind: input, shape index: {}]   ;;  %s700_s4 = inlined_call_operand.vmem [shape: f32[2,48,32], index: 4, kind: output, shape index: {}, may-alias: {1,4}]  }
   0x1   :  { %s646_s17 = smov 0  }
   0x2 LB: > { %s26_s18 = sadd.s32 1, %s609_s16  ;;  %p518_p0 = scmp.ge.s32.totalorder %s613_s17, 1  ;;  %s613_s17 = sphi %s646_s17, %s14_s17   ;;  %s609_s16 = sphi %s644_s16, %s702_s16   ;;  %s605_s15 = sphi %s642_s15, %s701_s15  }
   0x3   : > { %p28_p1 = scmp.ge.s32.totalorder %s26_s18, 2  ;;  %p200_p2 = scmp.lt.s32.totalorder %s613_s17, 3 }
   0x5   : > { %s704_s18 = smov (%p28_p1, %s26_s18), 0  ;;  %p201_p3 = pnand %p518_p0, %p200_p2 }
   0x6   : > { %v586_v0 = vld [vmem:[%s698_s2] sm:$0xff] (!%p201_p3)   ;;  %v615_v1 = vmov (!%p201_p3), 0.0   ;;  %v587_v2 = vld [vmem:[%s698_s2 + $0x8] sm:$0xff] (!%p201_p3)   ;;  %p244_p4 = scmp.lt.s32.totalorder (!%p201_p3), %s605_s15, 1  ;;  %vm616_vm0 = vmmov (!%p201_p3), 0   ;;  %vm311_vm1 = vcmask (!%p201_p3), 261120  }
   0x7   : > { %204 = sbr.rel (%p201_p3) target bundleno = 246 (0xf6), region = 36  ;;  %554 = vmatprep.subr.bf16.mxu1 (!%p201_p3), %v615_v1  ;;  %538 = vmatprep.subr.bf16.mxu0 (!%p201_p3), %v615_v1  ;;  %v530_v8 = vld [vmem:[%s699_s3] ss:$0 sm:$0xff] (!%p201_p3) }
   0x8   : > { %556 = vmatpush3.bf16.msra.mxu1 (!%p201_p3), %v586_v0  ;;  %539 = vmatpush3.bf16.msra.mxu0 (!%p201_p3), %v586_v0 }
   0x9   : > { %555 = vmatprep.subr.bf16.mxu1 (!%p201_p3), %v615_v1  ;;  %546 = vmatprep.mubr.msk.bf16.mxu1 (!%p201_p3), %vm616_vm0, %v615_v1 }
   0xa   : > { %540 = vmatprep.subr.bf16.mxu0 (!%p201_p3), %v615_v1  ;;  %542 = vmatprep.mubr.msk.bf16.mxu0 (!%p201_p3), %vm616_vm0, %v615_v1 }
   0xc   : > { %557 = vmatpush3.bf16.msra.mxu1 (!%p201_p3), %v587_v2  ;;  %541 = vmatpush3.bf16.msra.mxu0 (!%p201_p3), %v587_v2 }
   0xe   : > { %s706_s15 = smov (!%p244_p4, %s605_s15), 1 }
   0xf   : > { %s558_s23 = smul.u32 24, %s706_s15 }
  0x10   : > { %s559_s27 = smul.u32 48, %s706_s15 }
  0x11   : > { %s251_s26 = scalar_lea.vmem %s696_s0, %s558_s23 }
  0x12   : > { %v588_v3 = vld [vmem:[%s251_s26 + $0x8] sm:$0xff]   ;;  %v589_v4 = vld [vmem:[%s251_s26] sm:$0xff]   ;;  %v590_v5 = vld [vmem:[%s251_s26 + $0x10] sm:$0xff]   ;;  %s261_s30 = scalar_lea.vmem %s697_s1, %s559_s27  ;;  %s271_s9 = scalar_lea.vmem %s700_s4, %s559_s27 }
  0x13   : > { %547 = vmatmul.mubr.msk.bf16.vlgmr.msra.gmra.mrb[0].mxu1 %vm311_vm1, %v588_v3  ;;  %543 = vmatmul.mubr.msk.bf16.vlgmr.msra.gmra.mrb[0].mxu0 %vm311_vm1, %v589_v4  ;;  %v380_v6 = vld [vmem:[%s261_s30 + $0x10] sm:$0xff]  ;;  %v381_v9 = vld [vmem:[%s261_s30 + $0x18] sm:$0xff]  ;;  %v378_v13 = vld [vmem:[%s261_s30] sm:$0xff] }
  0x14   : > { %550 = vmatprep.mubr.msk.bf16.mxu1 %vm616_vm0, %v615_v1  ;;  %v379_v17 = vld [vmem:[%s261_s30 + $0x8] sm:$0xff]  ;;  %v382_v18 = vld [vmem:[%s261_s30 + $0x20] sm:$0xff] }
  0x15   : > { %v383_v19 = vld [vmem:[%s261_s30 + $0x28] sm:$0xff] }
  0x1b   : > { %551 = vmatmul.mubr.msk.bf16.gmra.mrb[4].mxu1 %vm311_vm1, %v590_v5 }
  0xe6   : > { %v363_v7 = vpop.f32.mrb[0].mxu1  ;;  %v355_v12 = vpop.f32.mrb[0].mxu0 }
  0xe7   : > { %v386_v10 = vadd.f32 %v380_v6, %v363_v7  ;;  %v548_v11 = vpop.f32.mrb[1].mxu1  ;;  %v384_v15 = vadd.f32 %v378_v13, %v355_v12  ;;  %v544_v16 = vpop.f32.mrb[1].mxu0 }
  0xe8   : > { %v366_v14 = vpop.f32.mrb[2].mxu1  ;;  %v358_v23 = vpop.f32.mrb[2].mxu0 }
  0xe9   : > { %v399_v20 = vadd.f32 %v530_v8, %v386_v10  ;;  %v387_v21 = vadd.f32 %v381_v9, %v366_v14  ;;  %v549_v22 = vpop.f32.mrb[3].mxu1  ;;  %v397_v24 = vadd.f32 %v530_v8, %v384_v15  ;;  %v385_v25 = vadd.f32 %v379_v17, %v358_v23  ;;  %v545_v26 = vpop.f32.mrb[3].mxu0 }
  0xeb   : > { %v400_v27 = vadd.f32 %v530_v8, %v387_v21  ;;  %405 = vst.msk [vmem:[%s271_s9 + $0x10] sm:$0xff] %vm311_vm1, %v399_v20  ;;  %v398_v28 = vadd.f32 %v530_v8, %v385_v25  ;;  %403 = vst.msk [vmem:[%s271_s9] sm:$0xff] %vm311_vm1, %v397_v24 }
  0xed   : > { %406 = vst.msk [vmem:[%s271_s9 + $0x18] sm:$0xff] %vm311_vm1, %v400_v27  ;;  %404 = vst.msk [vmem:[%s271_s9 + $0x8] sm:$0xff] %vm311_vm1, %v398_v28 }
  0xee   : > { %v371_v29 = vpop.f32.mrb[4].mxu1 }
  0xef   : > { %v388_v30 = vadd.f32 %v382_v18, %v371_v29  ;;  %v552_v31 = vpop.f32.mrb[5].mxu1 }
  0xf0   : > { %v374_v32 = vpop.f32.mrb[6].mxu1 }
  0xf1   : > { %v401_v33 = vadd.f32 %v530_v8, %v388_v30  ;;  %v389_v34 = vadd.f32 %v383_v19, %v374_v32  ;;  %v553_v35 = vpop.f32.mrb[7].mxu1 }
  0xf3   : > { %v402_v36 = vadd.f32 %v530_v8, %v389_v34  ;;  %407 = vst.msk [vmem:[%s271_s9 + $0x20] sm:$0xff] %vm311_vm1, %v401_v33 }
  0xf5   : > { %408 = vst.msk [vmem:[%s271_s9 + $0x28] sm:$0xff] %vm311_vm1, %v402_v36 }
  0xf6 PF: > { %s14_s17 = sadd.s32 1, %s613_s17   ;;  %s701_s15 = smov %s609_s16 }
  0xf7   : > { %p11_p5 = scmp.ge.s32.totalorder %s14_s17, 4   ;;  %s702_s16 = smov %s704_s18 }
  0xf9   :  { %13 = sbr.rel (!%p11_p5) target bundleno = 2 (0x2), region = 69 }

// kernel: ce_block_shared_forward.4
= control target key start
LH: loop header
LB: loop body
LE: loop exit
PB: predicated region body
PF: predicated region fallthrough
CT: control target
= control target key end

     0   :  { %s785_s18 = smov 0   ;;  %s787_s19 = smov 0   ;;  %s900_s0 = inlined_call_operand.vmem [shape: f32[2,48,32], index: 0, kind: input, shape index: {}]   ;;  %s901_s1 = inlined_call_operand.vmem [shape: f32[2,1,32], index: 1, kind: input, shape index: {}]   ;;  %s902_s2 = inlined_call_operand.vmem [shape: f32[2,1,32], index: 2, kind: input, shape index: {}]   ;;  %s903_s3 = inlined_call_operand.vmem [shape: bf16[32,96], index: 3, kind: input, shape index: {}]   ;;  %s904_s4 = inlined_call_operand.vmem [shape: f32[1,96], index: 4, kind: input, shape index: {}]   ;;  %s905_s5 = inlined_call_operand.vmem [shape: bf16[2,48,96], index: 5, kind: output, shape index: {}]  }
   0x1   :  { %s789_s20 = smov 0  }
   0x2 LB: > { %s27_s21 = sadd.s32 1, %s747_s19  ;;  %p637_p0 = scmp.ge.s32.totalorder %s751_s20, 1  ;;  %s751_s20 = sphi %s789_s20, %s15_s20   ;;  %s747_s19 = sphi %s787_s19, %s907_s19   ;;  %s743_s18 = sphi %s785_s18, %s906_s18  }
   0x3   : > { %p29_p1 = scmp.ge.s32.totalorder %s27_s21, 2  ;;  %p224_p2 = scmp.lt.s32.totalorder %s751_s20, 3 }
   0x5   : > { %s909_s21 = smov (%p29_p1, %s27_s21), 0  ;;  %p225_p3 = pnand %p637_p0, %p224_p2 }
   0x6   : > { %p267_p4 = scmp.lt.s32.totalorder (!%p225_p3), %s743_s18, 1  ;;  %vm299_vm0 = vcmask (!%p225_p3), 261120   ;;  %v715_v42 = vld [vmem:[%s903_s3] sm:$0xff] (!%p225_p3)   ;;  %v753_v43 = vmov (!%p225_p3), 0.0   ;;  %v716_v44 = vld [vmem:[%s903_s3 + $0x8] sm:$0xff] (!%p225_p3)   ;;  %vm754_vm1 = vmmov (!%p225_p3), 0  }
   0x7   : > { %228 = sbr.rel (%p225_p3) target bundleno = 566 (0x236), region = 40  ;;  %683 = vmatprep.subr.bf16.mxu1 (!%p225_p3), %v753_v43  ;;  %667 = vmatprep.subr.bf16.mxu0 (!%p225_p3), %v753_v43  ;;  %vm521_vm2 = vcmask (!%p225_p3), 781312  }
   0x8   : > { %685 = vmatpush3.bf16.msra.mxu1 (!%p225_p3), %v715_v42  ;;  %668 = vmatpush3.bf16.msra.mxu0 (!%p225_p3), %v715_v42 }
   0x9   : > { %684 = vmatprep.subr.bf16.mxu1 (!%p225_p3), %v753_v43  ;;  %669 = vmatprep.subr.bf16.mxu0 (!%p225_p3), %v753_v43 }
   0xa   : > { %675 = vmatprep.mubr.msk.bf16.mxu1 (!%p225_p3), %vm754_vm1, %v753_v43  ;;  %671 = vmatprep.mubr.msk.bf16.mxu0 (!%p225_p3), %vm754_vm1, %v753_v43 }
   0xc   : > { %686 = vmatpush3.bf16.msra.mxu1 (!%p225_p3), %v716_v44  ;;  %670 = vmatpush3.bf16.msra.mxu0 (!%p225_p3), %v716_v44 }
   0xe   : > { %s911_s18 = smov (!%p267_p4, %s743_s18), 1 }
   0xf   : > { %s687_s22 = smul.u32 48, %s911_s18  ;;  %s278_s7 = scalar_lea.vmem %s901_s1, %s911_s18 }
  0x10   : > { %s281_s10 = scalar_lea.vmem %s902_s2, %s911_s18  ;;  %s688_s11 = smul.u32 24, %s911_s18 }
  0x11   : > { %s274_s25 = scalar_lea.vmem %s900_s0, %s687_s22 }
  0x12   : > { %v295_v0 = vld [vmem:[%s274_s25 + $0x10] sm:$0xff]  ;;  %v296_v1 = vld [vmem:[%s274_s25 + $0x18] sm:$0xff]  ;;  %v293_v2 = vld [vmem:[%s274_s25] sm:$0xff]  ;;  %s290_s16 = scalar_lea.vmem %s905_s5, %s688_s11 }
  0x13   : > { %v306_v3 = vsel %vm299_vm0, %v295_v0, 0.0  ;;  %v300_v4 = vsel %vm299_vm0, %v293_v2, 0.0  ;;  %v294_v5 = vld [vmem:[%s274_s25 + $0x8] sm:$0xff]  ;;  %v309_v6 = vsel %vm299_vm0, %v296_v1, 0.0  ;;  %v297_v8 = vld [vmem:[%s274_s25 + $0x20] sm:$0xff] }
  0x14   : > { %307 = vadd.xlane.f32.xlu0 %v306_v3  ;;  %301 = vadd.xlane.f32.xlu1 %v300_v4  ;;  %v303_v7 = vsel %vm299_vm0, %v294_v5, 0.0  ;;  %v298_v9 = vld [vmem:[%s274_s25 + $0x28] sm:$0xff]  ;;  %v312_v10 = vsel %vm299_vm0, %v297_v8, 0.0 }
  0x15   : > { %v315_v11 = vsel %vm299_vm0, %v298_v9, 0.0 }
  0x18   : > { %310 = vadd.xlane.f32.xlu0 %v309_v6  ;;  %304 = vadd.xlane.f32.xlu1 %v303_v7  ;;  %v641_v7 = vld [vmem:[%s281_s10] ss:$0 sm:$0xff] }
  0x1c   : > { %313 = vadd.xlane.f32.xlu0 %v312_v10  ;;  %316 = vadd.xlane.f32.xlu1 %v315_v11 }
  0xa1   : > { %v308_v12 = vpop.xlane.xlu0 %307  ;;  %v302_v13 = vpop.xlane.xlu1 %301 }
  0xa2   : > { %v321_v14 = vmul.f32 0.03125, %v308_v12  ;;  %v319_v15 = vmul.f32 0.03125, %v302_v13 }
  0xa4   : > { %v815_v16 = vsub.f32 %v295_v0, %v321_v14  ;;  %v817_v17 = vsub.f32 %v293_v2, %v319_v15 }
  0xa5   : > { %v311_v18 = vpop.xlane.xlu0 %310  ;;  %v305_v19 = vpop.xlane.xlu1 %304 }
  0xa6   : > { %v322_v20 = vmul.f32 0.03125, %v311_v18  ;;  %v333_v21 = vmul.f32 %v815_v16, %v815_v16  ;;  %v320_v22 = vmul.f32 0.03125, %v305_v19  ;;  %v331_v23 = vmul.f32 %v817_v17, %v817_v17 }
  0xa8   : > { %v823_v24 = vsub.f32 %v296_v1, %v322_v20  ;;  %v343_v25 = vsel %vm299_vm0, %v333_v21, 0.0  ;;  %v826_v26 = vsub.f32 %v294_v5, %v320_v22  ;;  %v337_v28 = vsel %vm299_vm0, %v331_v23, 0.0  ;;  %v640_v1 = vld [vmem:[%s278_s7] ss:$0 sm:$0xff] }
  0xa9   : > { %344 = vadd.xlane.f32.xlu0 %v343_v25  ;;  %v314_v27 = vpop.xlane.xlu0 %313  ;;  %v317_v29 = vpop.xlane.xlu1 %316 }
  0xaa   : > { %v323_v30 = vmul.f32 0.03125, %v314_v27  ;;  %v334_v31 = vmul.f32 %v823_v24, %v823_v24  ;;  %v324_v32 = vmul.f32 0.03125, %v317_v29  ;;  %v332_v33 = vmul.f32 %v826_v26, %v826_v26 }
  0xac   : > { %v833_v34 = vsub.f32 %v297_v8, %v323_v30  ;;  %v346_v35 = vsel %vm299_vm0, %v334_v31, 0.0  ;;  %v836_v36 = vsub.f32 %v298_v9, %v324_v32  ;;  %v340_v38 = vsel %vm299_vm0, %v332_v33, 0.0 }
  0xad   : > { %347 = vadd.xlane.f32.xlu1 %v346_v35  ;;  %338 = vadd.xlane.f32.xlu0 %v337_v28  ;;  %v642_v28 = vld [vmem:[%s904_s4] ss:$0 sm:$0xff] }
  0xae   : > { %v335_v37 = vmul.f32 %v833_v34, %v833_v34  ;;  %v336_v39 = vmul.f32 %v836_v36, %v836_v36 }
  0xb0   : > { %v349_v40 = vsel %vm299_vm0, %v335_v37, 0.0  ;;  %v352_v41 = vsel %vm299_vm0, %v336_v39, 0.0 }
  0xb1   : > { %350 = vadd.xlane.f32.xlu0 %v349_v40  ;;  %341 = vadd.xlane.f32.xlu1 %v340_v38 }
  0xb5   : > { %353 = vadd.xlane.f32.xlu1 %v352_v41 }
 0x136   : > { %v345_v45 = vpop.xlane.xlu0 %344 }
 0x137   : > { %v357_v46 = vmul.f32 0.03125, %v345_v45 }
 0x139   : > { %v363_v47 = vadd.f32 1e-05, %v357_v46 }
 0x13a   : > { %v339_v48 = vpop.xlane.xlu0 %338  ;;  %v348_v49 = vpop.xlane.xlu1 %347 }
 0x13b   : > { %717 = vrsqrt.f32 %v363_v47  ;;  %v355_v50 = vmul.f32 0.03125, %v339_v48  ;;  %v358_v51 = vmul.f32 0.03125, %v348_v49 }
 0x13d   : > { %v361_v52 = vadd.f32 1e-05, %v355_v50  ;;  %v364_v53 = vadd.f32 1e-05, %v358_v51 }
 0x13e   : > { %v351_v54 = vpop.xlane.xlu0 %350  ;;  %v342_v55 = vpop.xlane.xlu1 %341 }
 0x13f   : > { %719 = vrsqrt.f32 %v361_v52  ;;  %v359_v56 = vmul.f32 0.03125, %v351_v54  ;;  %v356_v57 = vmul.f32 0.03125, %v342_v55 }
 0x140   : > { %721 = vrsqrt.f32 %v364_v53 }
 0x141   : > { %v365_v58 = vadd.f32 1e-05, %v359_v56  ;;  %v362_v59 = vadd.f32 1e-05, %v356_v57 }
 0x142   : > { %v354_v60 = vpop.xlane.xlu1 %353 }
 0x143   : > { %723 = vrsqrt.f32 %v365_v58  ;;  %v360_v61 = vmul.f32 0.03125, %v354_v60 }
 0x144   : > { %725 = vrsqrt.f32 %v362_v59 }
 0x145   : > { %v718_v62 = vpop.eup %717  ;;  %v366_v63 = vadd.f32 1e-05, %v360_v61 }
 0x146   : > { %v375_v0 = vmul.f32 %v718_v62, %v815_v16 }
 0x147   : > { %727 = vrsqrt.f32 %v366_v63 }
 0x148   : > { %v388_v6 = vmul.f32 %v640_v1, %v375_v0 }
 0x149   : > { %v720_v2 = vpop.eup %719 }
 0x14a   : > { %v722_v3 = vpop.eup %721  ;;  %v373_v4 = vmul.f32 %v720_v2, %v817_v17  ;;  %v401_v13 = vadd.f32 %v641_v7, %v388_v6 }
 0x14b   : > { %v376_v5 = vmul.f32 %v722_v3, %v823_v24 }
 0x14c   : > { %v386_v15 = vmul.f32 %v640_v1, %v373_v4 }
 0x14d   : > { %v724_v8 = vpop.eup %723  ;;  %v389_v9 = vmul.f32 %v640_v1, %v376_v5 }
 0x14e   : > { %v726_v10 = vpop.eup %725  ;;  %v377_v11 = vmul.f32 %v724_v8, %v833_v34  ;;  %v399_v21 = vadd.f32 %v641_v7, %v386_v15 }
 0x14f   : > { %v374_v12 = vmul.f32 %v726_v10, %v826_v26  ;;  %v402_v14 = vadd.f32 %v641_v7, %v389_v9 }
 0x150   : > { %v390_v20 = vmul.f32 %v640_v1, %v377_v11 }
 0x151   : > { %v728_v16 = vpop.eup %727  ;;  %v406_v18 = vpack.c.bf16 %v402_v14, %v401_v13  ;;  %v387_v19 = vmul.f32 %v640_v1, %v374_v12 }
 0x152   : > { %v378_v17 = vmul.f32 %v728_v16, %v836_v36  ;;  %v403_v25 = vadd.f32 %v641_v7, %v390_v20 }
 0x153   : > { %676 = vmatmul.mubr.msk.bf16.vlgmr.msra.gmra.mrb[0].mxu1 %vm299_vm0, %v406_v18  ;;  %v400_v22 = vadd.f32 %v641_v7, %v387_v19 }
 0x154   : > { %679 = vmatprep.mubr.msk.bf16.mxu1 %vm754_vm1, %v753_v43  ;;  %v391_v23 = vmul.f32 %v640_v1, %v378_v17 }
 0x155   : > { %v405_v24 = vpack.c.bf16 %v400_v22, %v399_v21 }
 0x156   : > { %v404_v26 = vadd.f32 %v641_v7, %v391_v23 }
 0x157   : > { %672 = vmatmul.mubr.msk.bf16.vlgmr.msra.gmra.mrb[0].mxu0 %vm299_vm0, %v405_v24 }
 0x158   : > { %v407_v27 = vpack.c.bf16 %v404_v26, %v403_v25 }
 0x15b   : > { %680 = vmatmul.mubr.msk.bf16.gmra.mrb[4].mxu1 %vm299_vm0, %v407_v27 }
 0x226   : > { %v482_v29 = vpop.f32.mrb[0].mxu1 }
 0x227   : > { %v483_v30 = vadd.f32 %v642_v28, %v482_v29  ;;  %v677_v31 = vpop.f32.mrb[1].mxu1 }
 0x228   : > { %v485_v32 = vpop.f32.mrb[2].mxu1 }
 0x229   : > { %v658_v33 = vpack.c.bf16 %v483_v30, %v483_v30  ;;  %v486_v34 = vadd.f32 %v642_v28, %v485_v32  ;;  %v678_v35 = vpop.f32.mrb[3].mxu1 }
 0x22a   : > { %v474_v36 = vpop.f32.mrb[0].mxu0 }
 0x22b   : > { %524 = vst.msk [vmem:[%s290_s16 + $0x8] sm:$0xf] %vm521_vm2, %v658_v33  ;;  %v659_v37 = vpack.c.bf16 %v486_v34, %v486_v34  ;;  %v475_v38 = vadd.f32 %v642_v28, %v474_v36  ;;  %v673_v39 = vpop.f32.mrb[1].mxu0 }
 0x22c   : > { %v477_v40 = vpop.f32.mrb[2].mxu0 }
 0x22d   : > { %525 = vst.msk [vmem:[%s290_s16 + $0xc] sm:$0xf] %vm521_vm2, %v659_v37  ;;  %v656_v41 = vpack.c.bf16 %v475_v38, %v475_v38  ;;  %v478_v42 = vadd.f32 %v642_v28, %v477_v40  ;;  %v674_v43 = vpop.f32.mrb[3].mxu0 }
 0x22e   : > { %v490_v44 = vpop.f32.mrb[4].mxu1 }
 0x22f   : > { %522 = vst.msk [vmem:[%s290_s16] sm:$0xf] %vm521_vm2, %v656_v41  ;;  %v657_v45 = vpack.c.bf16 %v478_v42, %v478_v42  ;;  %v491_v46 = vadd.f32 %v642_v28, %v490_v44  ;;  %v681_v47 = vpop.f32.mrb[5].mxu1 }
 0x230   : > { %v493_v48 = vpop.f32.mrb[6].mxu1 }
 0x231   : > { %523 = vst.msk [vmem:[%s290_s16 + $0x4] sm:$0xf] %vm521_vm2, %v657_v45  ;;  %v660_v49 = vpack.c.bf16 %v491_v46, %v491_v46  ;;  %v494_v50 = vadd.f32 %v642_v28, %v493_v48  ;;  %v682_v51 = vpop.f32.mrb[7].mxu1 }
 0x233   : > { %526 = vst.msk [vmem:[%s290_s16 + $0x10] sm:$0xf] %vm521_vm2, %v660_v49  ;;  %v661_v52 = vpack.c.bf16 %v494_v50, %v494_v50 }
 0x235   : > { %527 = vst.msk [vmem:[%s290_s16 + $0x14] sm:$0xf] %vm521_vm2, %v661_v52 }
 0x236 PF: > { %s15_s20 = sadd.s32 1, %s751_s20   ;;  %s906_s18 = smov %s747_s19 }
 0x237   : > { %p12_p5 = scmp.ge.s32.totalorder %s15_s20, 4   ;;  %s907_s19 = smov %s909_s21 }
 0x239   :  { %14 = sbr.rel (!%p12_p5) target bundleno = 2 (0x2), region = 76 }

// kernel: ce_block_shared_forward.5
= control target key start
LH: loop header
LB: loop body
LE: loop exit
PB: predicated region body
PF: predicated region fallthrough
CT: control target
= control target key end

     0   :  { %s1106_s9 = smov 0   ;;  %s1108_s10 = smov 0   ;;  %s1275_s0 = inlined_call_operand.vmem [shape: bf16[2,2,24,96], index: 0, kind: input, shape index: {}, may-alias: {0,1}]   ;;  %s1276_s1 = inlined_call_operand.vmem [shape: bf16[2,2,24,96], index: 1, kind: input, shape index: {}, may-alias: {0,1}]   ;;  %s1277_s2 = inlined_call_operand.vmem [shape: bf16[2,2,24,32], index: 2, kind: output, shape index: {}]  }
   0x1   :  { %s1110_s11 = smov 0   ;;  %s1112_s12 = smov 0  }
   0x2   :  { %s1114_s13 = smov 0  }
   0x3 LB: > { %s21_s14 = sadd.s32 1, %s1073_s11  ;;  %s24_s15 = sadd.s32 1, %s1077_s12  ;;  %s1081_s13 = sphi %s1114_s13, %s12_s13   ;;  %s1077_s12 = sphi %s1112_s12, %s1281_s12   ;;  %s1073_s11 = sphi %s1110_s11, %s1280_s11   ;;  %s1069_s10 = sphi %s1108_s10, %s1279_s10   ;;  %s1065_s9 = sphi %s1106_s9, %s1278_s9  }
   0x4   : > { %p22_p0 = scmp.ge.s32.totalorder %s21_s14, 2  ;;  %p869_p1 = scmp.ge.s32.totalorder %s1081_s13, 1 }
   0x5   : > { %p152_p2 = scmp.lt.s32.totalorder %s1081_s13, 5 }
   0x6   : > { %s1283_s14 = smov (%p22_p0, %s21_s14), 0  ;;  %s1285_s15 = smov (!%p22_p0, %s24_s15), %s1077_s12 }
   0x7   : > { %p153_p3 = pnand %p869_p1, %p152_p2  ;;  %p26_p4 = scmp.ge.s32.totalorder %s1285_s15, 2 }
   0x8   : > { %p192_p5 = scmp.lt.s32.totalorder (!%p153_p3), %s1069_s10, 1  ;;  %p194_p6 = scmp.lt.s32.totalorder (!%p153_p3), %s1065_s9, 1  ;;  %v1083_v0 = vmov (!%p153_p3), 0.0   ;;  %vm1084_vm0 = vmmov (!%p153_p3), 0   ;;  %vm231_vm1 = vcmask (!%p153_p3), 130048   ;;  %vm296_vm2 = vcmask (!%p153_p3), 1043456  }
   0x9   : > { %s1287_s15 = smov (%p26_p4, %s1285_s15), 0  ;;  %156 = sbr.rel (%p153_p3) target bundleno = 2115 (0x843), region = 28 }
   0xa   : > { %909 = vmatprep.subr.bf16.mxu0 (!%p153_p3), %v1083_v0  ;;  %915 = vmatprep.subr.bf16.mxu1 (!%p153_p3), %v1083_v0  ;;  %s1085_s24 = smov (!%p153_p3), 96   ;;  %s201_s25 = ssub.s32 (!%p153_p3), 1, %s1069_s10  ;;  %vm278_vm3 = vcmask (!%p153_p3), 64512   ;;  %vm405_vm4 = vcmask (!%p153_p3), 261120   ;;  %vm745_vm5 = vcmask (!%p153_p3), 257024  }
   0xb   : > { %911 = vmatprep.mubr.msk.bf16.mxu0 (!%p153_p3), %vm1084_vm0, %v1083_v0  ;;  %917 = vmatprep.mubr.msk.bf16.mxu1 (!%p153_p3), %vm1084_vm0, %v1083_v0  ;;  %s1086_s26 = smov (!%p153_p3), 64   ;;  %p202_p7 = scmp.lt.s32.totalorder (!%p153_p3), %s201_s25, 1 }
   0xc   : > { %s1087_s5 = smov (!%p153_p3), 112   ;;  %s1088_s6 = smov (!%p153_p3), 80  }
   0xd   : > { %s1089_s7 = smov (!%p153_p3), 48   ;;  %s1090_s8 = smov (!%p153_p3), 16  }
  0x10   : > { %s193_s16 = scalar_select %p192_p5, %s1069_s10, 1 }
  0x11   : > { %s1289_s9 = smov (!%p194_p6, %s1065_s9), 1  ;;  %s1291_s25 = smov (!%p202_p7, %s201_s25), 1 }
  0x12   : > { %s966_s17 = smul.u32 6, %s193_s16 }
  0x13   : > { %s965_s18 = smul.u32 3, %s1289_s9 }
  0x14   : > { %s967_s27 = smul.u32 6, %s1291_s25 }
  0x15   : > { %s1146_s19 = sadd.s32 %s966_s17, %s965_s18 }
  0x16   : > { %s870_s20 = sshll.u32 %s1146_s19, 2  ;;  %s208_s28 = sadd.s32 %s967_s27, %s965_s18 }
  0x17   : > { %s1154_s23 = scalar_lea.vmem %s1275_s0, %s870_s20  ;;  %s871_s29 = sshll.u32 %s208_s28, 2 }
  0x18   : > { %v222_v1 = vld [vmem:[%s1154_s23] sm:$0xf]  ;;  %s210_s4 = scalar_lea.vmem %s1276_s1, %s871_s29  ;;  %v1182_v19 = vld [vmem:[%s1154_s23 + $0x4] sm:$0xff]   ;;  %s220_s16 = scalar_lea.vmem %s1277_s2, %s870_s20 }
  0x19   : > { %v1157_v2 = vcombine.low %v222_v1, %v222_v1  ;;  %v1017_v5 = vld [vmem:[%s210_s4] ss:$0 sps:$4 sm:$0xff]  }
  0x1a   : > { %v1173_v6 = vsel %vm296_vm2, %v222_v1, %v1017_v5 }
  0x1b   : > { %229 = vrot.lane.b32.xlu0 %v1157_v2, %s1085_s24  ;;  %291 = vrot.lane.b32.xlu1 %v1157_v2, %s1086_s26 }
  0x1f   : > { %351 = vrot.lane.b32.xlu1 %v1173_v6, %s1085_s24 }
  0x8d   : > { %v230_v3 = vpop.permute.xlu0 %229  ;;  %v292_v12 = vpop.permute.xlu1 %291 }
  0x8e   : > { %v236_v4 = vsel %vm231_vm1, %v230_v3, 0  ;;  %v298_v13 = vsel %vm296_vm2, %v292_v12, 0 }
  0x8f   : > { %910 = vmatpush3.bf16.xpose.msra.mxu0 %v236_v4  ;;  %916 = vmatpush3.bf16.msra.mxu1 %v298_v13 }
  0x90   : > { %929 = vmatprep.subr.bf16.mxu0 %v1083_v0  ;;  %921 = vmatprep.subr.bf16.mxu1 %v1083_v0 }
  0x91   : > { %v352_v20 = vpop.permute.xlu1 %351 }
  0x92   : > { %v359_v25 = vsel %vm231_vm1, %v352_v20, 0 }
  0x96   : > { %912 = vmatmul.mubr.msk.bf16.vlgmr.msra.gmra.mrb[0].mxu0 %vm231_vm1, %v222_v1 }
  0x97   : > { %933 = vmatprep.mubr.msk.bf16.mxu0 %vm1084_vm0, %v1083_v0 }
 0x169   : > { %v272_v7 = vpop.f32.mrb[0].mxu0 }
 0x16a   : > { %v913_v8 = vpop.f32.mrb[1].mxu0  ;;  %v279_v9 = vsel %vm278_vm3, %v272_v7, -inf }
 0x16b   : > { %280 = vmax.xlane.f32.xlu0 %v279_v9  ;;  %v275_v10 = vpop.f32.mrb[2].mxu0 }
 0x16c   : > { %v914_v11 = vpop.f32.mrb[3].mxu0 }
 0x1f8   : > { %v281_v14 = vpop.xlane.xlu0 %280 }
 0x1f9   : > { %v282_v15 = vsub.f32 %v272_v7, %v281_v14 }
 0x1fb   : > { %v283_v16 = vmul.f32 1.442695, %v282_v15 }
 0x1fd   : > { %1019 = vpow2.f32 %v283_v16 }
 0x207   : > { %v1020_v17 = vpop.eup %1019 }
 0x208   : > { %v285_v18 = vsel %vm278_vm3, %v1020_v17, 0.0 }
 0x209   : > { %286 = vadd.xlane.f32.xlu1 %v285_v18 }
 0x21a   : > { %353 = vrot.lane.b32.xlu1 %v1182_v19, %s1085_s24 }
 0x296   : > { %v287_v21 = vpop.xlane.xlu1 %286 }
 0x297   : > { %1021 = vrcp.f32 %v287_v21 }
 0x29a   : > { %v354_v26 = vpop.permute.xlu1 %353 }
 0x29b   : > { %v362_v27 = vsel %vm231_vm1, %v354_v26, 0 }
 0x2a1   : > { %v1022_v22 = vpop.eup %1021 }
 0x2a2   : > { %v289_v23 = vmul.f32 %v1022_v22, %v1020_v17 }
 0x2a4   : > { %v290_v24 = vpack.c.bf16 %v289_v23, %v289_v23 }
 0x2a6   : > { %918 = vmatmul.mubr.msk.bf16.vlgmr.msra.gmra.mrb[0].mxu1 %vm278_vm3, %v290_v24 }
 0x2a7   : > { %922 = vmatpush3.bf16.xpose.msra.mxu1 %v359_v25  ;;  %925 = vmatprep.mubr.msk.bf16.mxu1 %vm1084_vm0, %v1083_v0 }
 0x2a8   : > { %923 = vmatprep.subr.bf16.mxu1 %v1083_v0 }
 0x2af   : > { %924 = vmatpush3.bf16.xpose.msra.mxu1 %v362_v27 }
 0x2b0   : > { %943 = vmatprep.subr.bf16.mxu1 %v1083_v0 }
 0x2b6   : > { %926 = vmatmul.mubr.msk.bf16.vlgmr.msra.gmra.mrb[4].mxu1 %vm231_vm1, %v1182_v19 }
 0x2b7   : > { %945 = vmatprep.mubr.msk.bf16.mxu1 %vm1084_vm0, %v1083_v0 }
 0x379   : > { %v1197_v28 = vpop.f32.mrb[0].mxu1 }
 0x37a   : > { %v919_v29 = vpop.f32.mrb[1].mxu1 }
 0x37b   : > { %v337_v30 = vpop.f32.mrb[2].mxu1 }
 0x37c   : > { %v920_v31 = vpop.f32.mrb[3].mxu1 }
 0x389   : > { %v398_v32 = vpop.f32.mrb[4].mxu1 }
 0x38a   : > { %v927_v33 = vpop.f32.mrb[5].mxu1  ;;  %v406_v34 = vsel %vm405_vm4, %v398_v32, -inf }
 0x38b   : > { %407 = vmax.xlane.f32.xlu1 %v406_v34  ;;  %v401_v35 = vpop.f32.mrb[6].mxu1 }
 0x38c   : > { %v928_v36 = vpop.f32.mrb[7].mxu1  ;;  %v409_v37 = vsel %vm405_vm4, %v401_v35, -inf }
 0x38d   : > { %410 = vmax.xlane.f32.xlu0 %v409_v37 }
 0x39c   : > { %431 = vrot.lane.b32.xlu1 %v1182_v19, %s1086_s26 }
 0x3a0   : > { %591 = vrot.lane.b32.xlu1 %v1182_v19, %s1087_s5 }
 0x3a3   : > { %429 = vrot.lane.b32.xlu0 %v1173_v6, %s1086_s26 }
 0x418   : > { %v408_v38 = vpop.xlane.xlu1 %407 }
 0x419   : > { %v412_v39 = vsub.f32 %v398_v32, %v408_v38 }
 0x41a   : > { %v411_v40 = vpop.xlane.xlu0 %410 }
 0x41b   : > { %v414_v41 = vmul.f32 1.442695, %v412_v39  ;;  %v413_v42 = vsub.f32 %v401_v35, %v411_v40 }
 0x41c   : > { %v432_v49 = vpop.permute.xlu1 %431 }
 0x41d   : > { %1023 = vpow2.f32 %v414_v41  ;;  %v416_v43 = vmul.f32 1.442695, %v413_v42 }
 0x41e   : > { %v430_v44 = vpop.permute.xlu0 %429 }
 0x41f   : > { %1025 = vpow2.f32 %v416_v43  ;;  %930 = vmatpush3.bf16.msra.mxu0 %v430_v44 }
 0x420   : > { %931 = vmatprep.subr.bf16.mxu0 %v1083_v0  ;;  %v592_v1 = vpop.permute.xlu1 %591 }
 0x423   : > { %932 = vmatpush3.bf16.msra.mxu0 %v432_v49 }
 0x424   : > { %937 = vmatprep.subr.bf16.mxu0 %v1083_v0 }
 0x427   : > { %v1024_v45 = vpop.eup %1023 }
 0x428   : > { %v418_v46 = vsel %vm405_vm4, %v1024_v45, 0.0 }
 0x429   : > { %v1026_v47 = vpop.eup %1025  ;;  %419 = vadd.xlane.f32.xlu0 %v418_v46 }
 0x42a   : > { %v421_v48 = vsel %vm405_vm4, %v1026_v47, 0.0 }
 0x42d   : > { %422 = vadd.xlane.f32.xlu0 %v421_v48 }
 0x443   : > { %483 = vrot.lane.b32.xlu0 %v1157_v2, %s1088_s6 }
 0x447   : > { %593 = vrot.lane.b32.xlu0 %v1173_v6, %s1088_s6 }
 0x44b   : > { %481 = vrot.lane.b32.xlu0 %v1157_v2, %s1087_s5 }
 0x44f   : > { %595 = vrot.lane.b32.xlu0 %v1182_v19, %s1088_s6 }
 0x4b6   : > { %v420_v50 = vpop.xlane.xlu0 %419 }
 0x4b7   : > { %1027 = vrcp.f32 %v420_v50 }
 0x4ba   : > { %v423_v51 = vpop.xlane.xlu0 %422 }
 0x4bb   : > { %1029 = vrcp.f32 %v423_v51 }
 0x4be   : > { %v484_v53 = vpop.permute.xlu0 %483 }
 0x4bf   : > { %v489_v57 = vsel %vm231_vm1, %v484_v53, 0 }
 0x4c1   : > { %v1028_v52 = vpop.eup %1027 }
 0x4c2   : > { %v426_v55 = vmul.f32 %v1028_v52, %v1024_v45  ;;  %v594_v59 = vpop.permute.xlu0 %593 }
 0x4c3   : > { %v601_v61 = vsel %vm231_vm1, %v594_v59, 0 }
 0x4c5   : > { %v1030_v54 = vpop.eup %1029 }
 0x4c6   : > { %v427_v56 = vmul.f32 %v1030_v54, %v1026_v47  ;;  %v482_v60 = vpop.permute.xlu0 %481 }
 0x4c8   : > { %v428_v58 = vpack.c.bf16 %v427_v56, %v426_v55 }
 0x4ca   : > { %934 = vmatmul.mubr.msk.bf16.vlgmr.msra.gmra.mrb[4].mxu0 %vm405_vm4, %v428_v58  ;;  %v596_v62 = vpop.permute.xlu0 %595 }
 0x4cb   : > { %938 = vmatpush3.bf16.xpose.msra.mxu0 %v489_v57  ;;  %939 = vmatprep.mubr.msk.bf16.mxu0 %vm1084_vm0, %v1083_v0  ;;  %v604_v63 = vsel %vm231_vm1, %v596_v62, 0 }
 0x4cc   : > { %949 = vmatprep.subr.bf16.mxu0 %v1083_v0 }
 0x4d2   : > { %940 = vmatmul.mubr.msk.bf16.vlgmr.msra.gmra.mrb[8].mxu0 %vm231_vm1, %v482_v60 }
 0x4d3   : > { %950 = vmatpush3.bf16.xpose.msra.mxu0 %v601_v61  ;;  %953 = vmatprep.mubr.msk.bf16.mxu0 %vm1084_vm0, %v1083_v0 }
 0x4d4   : > { %951 = vmatprep.subr.bf16.mxu0 %v1083_v0 }
 0x4db   : > { %952 = vmatpush3.bf16.xpose.msra.mxu0 %v604_v63 }
 0x4e2   : > { %954 = vmatmul.mubr.msk.bf16.vlgmr.msra.gmra.mrb[12].mxu0 %vm231_vm1, %v592_v1 }
 0x59d   : > { %v1226_v3 = vpop.f32.mrb[4].mxu0 }
 0x59e   : > { %v479_v4 = vpack.c.bf16 %v1226_v3, %v1197_v28  ;;  %v935_v5 = vpop.f32.mrb[5].mxu0 }
 0x59f   : > { %v1230_v7 = vpop.f32.mrb[6].mxu0 }
 0x5a0   : > { %v936_v8 = vpop.f32.mrb[7].mxu0  ;;  %v480_v59 = vpack.c.bf16 %v1230_v7, %v1230_v7 }
 0x5a5   : > { %v525_v9 = vpop.f32.mrb[8].mxu0 }
 0x5a6   : > { %v941_v10 = vpop.f32.mrb[9].mxu0  ;;  %v531_v11 = vsel %vm278_vm3, %v525_v9, -inf }
 0x5a7   : > { %532 = vmax.xlane.f32.xlu0 %v531_v11  ;;  %v528_v12 = vpop.f32.mrb[10].mxu0 }
 0x5a8   : > { %v942_v13 = vpop.f32.mrb[11].mxu0 }
 0x5b5   : > { %v640_v14 = vpop.f32.mrb[12].mxu0 }
 0x5b6   : > { %v955_v15 = vpop.f32.mrb[13].mxu0  ;;  %v647_v16 = vsel %vm405_vm4, %v640_v14, -inf }
 0x5b7   : > { %648 = vmax.xlane.f32.xlu1 %v647_v16  ;;  %v643_v17 = vpop.f32.mrb[14].mxu0 }
 0x5b8   : > { %v956_v18 = vpop.f32.mrb[15].mxu0  ;;  %v650_v20 = vsel %vm405_vm4, %v643_v17, -inf }
 0x5b9   : > { %651 = vmax.xlane.f32.xlu0 %v650_v20 }
 0x5c8   : > { %543 = vrot.lane.b32.xlu1 %v1157_v2, %s1089_s7 }
 0x634   : > { %v533_v21 = vpop.xlane.xlu0 %532 }
 0x635   : > { %v534_v22 = vsub.f32 %v525_v9, %v533_v21 }
 0x637   : > { %v535_v23 = vmul.f32 1.442695, %v534_v22 }
 0x639   : > { %1031 = vpow2.f32 %v535_v23 }
 0x643   : > { %v1032_v24 = vpop.eup %1031 }
 0x644   : > { %v649_v25 = vpop.xlane.xlu1 %648  ;;  %v537_v26 = vsel %vm278_vm3, %v1032_v24, 0.0 }
 0x645   : > { %v653_v27 = vsub.f32 %v640_v14, %v649_v25  ;;  %538 = vadd.xlane.f32.xlu0 %v537_v26 }
 0x646   : > { %v652_v29 = vpop.xlane.xlu0 %651 }
 0x647   : > { %v655_v30 = vmul.f32 1.442695, %v653_v27  ;;  %v654_v31 = vsub.f32 %v643_v17, %v652_v29 }
 0x648   : > { %v544_v32 = vpop.permute.xlu1 %543 }
 0x649   : > { %1033 = vpow2.f32 %v655_v30  ;;  %v657_v33 = vmul.f32 1.442695, %v654_v31  ;;  %v549_v34 = vsel %vm296_vm2, %v544_v32, 0 }
 0x64a   : > { %944 = vmatpush3.bf16.msra.mxu1 %v549_v34 }
 0x64b   : > { %1035 = vpow2.f32 %v657_v33  ;;  %957 = vmatprep.subr.bf16.mxu1 %v1083_v0 }
 0x653   : > { %v1034_v2 = vpop.eup %1033 }
 0x654   : > { %v659_v35 = vsel %vm405_vm4, %v1034_v2, 0.0 }
 0x655   : > { %v1036_v36 = vpop.eup %1035  ;;  %660 = vadd.xlane.f32.xlu1 %v659_v35 }
 0x656   : > { %v662_v37 = vsel %vm405_vm4, %v1036_v36, 0.0 }
 0x657   : > { %663 = vadd.xlane.f32.xlu0 %v662_v37 }
 0x666   : > { %672 = vrot.lane.b32.xlu1 %v1182_v19, %s1089_s7 }
 0x66d   : > { %670 = vrot.lane.b32.xlu0 %v1173_v6, %s1089_s7 }
 0x6d2   : > { %v539_v38 = vpop.xlane.xlu0 %538 }
 0x6d3   : > { %1037 = vrcp.f32 %v539_v38 }
 0x6dd   : > { %v1038_v39 = vpop.eup %1037 }
 0x6de   : > { %v541_v40 = vmul.f32 %v1038_v39, %v1032_v24 }
 0x6e0   : > { %v542_v41 = vpack.c.bf16 %v541_v40, %v541_v40 }
 0x6e2   : > { %v661_v42 = vpop.xlane.xlu1 %660  ;;  %946 = vmatmul.mubr.msk.bf16.vlgmr.msra.gmra.mrb[8].mxu1 %vm278_vm3, %v542_v41 }
 0x6e3   : > { %1039 = vrcp.f32 %v661_v42  ;;  %961 = vmatprep.mubr.msk.bf16.mxu1 %vm1084_vm0, %v1083_v0 }
 0x6e4   : > { %v664_v43 = vpop.xlane.xlu0 %663 }
 0x6e5   : > { %1041 = vrcp.f32 %v664_v43 }
 0x6e6   : > { %v673_v45 = vpop.permute.xlu1 %672 }
 0x6e8   : > { %v671_v44 = vpop.permute.xlu0 %670 }
 0x6e9   : > { %958 = vmatpush3.bf16.msra.mxu1 %v671_v44 }
 0x6ea   : > { %959 = vmatprep.subr.bf16.mxu1 %v1083_v0 }
 0x6ed   : > { %v1040_v6 = vpop.eup %1039  ;;  %960 = vmatpush3.bf16.msra.mxu1 %v673_v45 }
 0x6ee   : > { %v667_v46 = vmul.f32 %v1040_v6, %v1034_v2 }
 0x6ef   : > { %v1042_v19 = vpop.eup %1041 }
 0x6f0   : > { %v668_v47 = vmul.f32 %v1042_v19, %v1036_v36 }
 0x6f2   : > { %v669_v48 = vpack.c.bf16 %v668_v47, %v667_v46 }
 0x6f4   : > { %962 = vmatmul.mubr.msk.bf16.vlgmr.msra.gmra.mrb[12].mxu1 %vm405_vm4, %v669_v48 }
 0x7b5   : > { %v585_v49 = vpop.f32.mrb[8].mxu1 }
 0x7b6   : > { %v947_v50 = vpop.f32.mrb[9].mxu1 }
 0x7b7   : > { %v588_v51 = vpop.f32.mrb[10].mxu1 }
 0x7b8   : > { %v948_v52 = vpop.f32.mrb[11].mxu1 }
 0x7c7   : > { %v713_v53 = vpop.f32.mrb[12].mxu1 }
 0x7c8   : > { %v720_v54 = vpack.c.bf16 %v713_v53, %v585_v49  ;;  %v963_v55 = vpop.f32.mrb[13].mxu1 }
 0x7c9   : > { %v716_v56 = vpop.f32.mrb[14].mxu1 }
 0x7ca   : > { %v721_v57 = vpack.c.bf16 %v716_v56, %v716_v56  ;;  %724 = vrot.lane.b32.xlu1 %v720_v54, %s1090_s8  ;;  %v964_v0 = vpop.f32.mrb[15].mxu1 }
 0x7cc   : > { %726 = vrot.lane.b32.xlu0 %v721_v57, %s1090_s8 }
 0x83c   : > { %v725_v58 = vpop.permute.xlu1 %724 }
 0x83d   : > { %v730_v60 = vsel %vm231_vm1, %v479_v4, %v725_v58 }
 0x83e   : > { %v884_v61 = vcombine.low %v730_v60, %v730_v60  ;;  %v885_v62 = vcombine.high %v730_v60, %v730_v60  ;;  %v727_v63 = vpop.permute.xlu0 %726 }
 0x83f   : > { %v733_v1 = vsel %vm231_vm1, %v480_v59, %v727_v63 }
 0x840   : > { %746 = vst.msk [vmem:[%s220_s16] sm:$0xf] %vm745_vm5, %v884_v61  ;;  %747 = vst.msk [vmem:[%s220_s16 + $0x4] sm:$0xf] %vm745_vm5, %v885_v62  ;;  %v886_v5 = vcombine.low %v733_v1, %v733_v1 }
 0x842   : > { %748 = vst.msk [vmem:[%s220_s16 + $0x8] sm:$0xf] %vm745_vm5, %v886_v5 }
 0x843 PF: > { %s12_s13 = sadd.s32 1, %s1081_s13   ;;  %s1278_s9 = smov %s1073_s11 }
 0x844   : > { %p9_p8 = scmp.ge.s32.totalorder %s12_s13, 6   ;;  %s1279_s10 = smov %s1077_s12 }
 0x845   : > { %s1280_s11 = smov %s1283_s14  ;;  %s1281_s12 = smov %s1287_s15 }
 0x846   :  { %11 = sbr.rel (!%p9_p8) target bundleno = 3 (0x3), region = 61 }

// kernel: ce_block_shared_forward.7
= control target key start
LH: loop header
LB: loop body
LE: loop exit
PB: predicated region body
PF: predicated region fallthrough
CT: control target
= control target key end

     0   :  { %s1058_s24 = smov 0   ;;  %s1060_s25 = smov 0   ;;  %s1253_s0 = inlined_call_operand.vmem [shape: f32[2,48,32], index: 0, kind: input, shape index: {}, may-alias: {0,7}]   ;;  %s1254_s1 = inlined_call_operand.vmem [shape: f32[2,1,32], index: 1, kind: input, shape index: {}]   ;;  %s1255_s2 = inlined_call_operand.vmem [shape: f32[2,1,32], index: 2, kind: input, shape index: {}]   ;;  %s1256_s3 = inlined_call_operand.vmem [shape: bf16[32,128], index: 3, kind: input, shape index: {}]   ;;  %s1257_s4 = inlined_call_operand.vmem [shape: f32[1,128], index: 4, kind: input, shape index: {}]   ;;  %s1258_s5 = inlined_call_operand.vmem [shape: bf16[128,32], index: 5, kind: input, shape index: {}]   ;;  %s1259_s6 = inlined_call_operand.vmem [shape: f32[1,32], index: 6, kind: input, shape index: {}]   ;;  %s1260_s7 = inlined_call_operand.vmem [shape: f32[2,48,32], index: 7, kind: output, shape index: {}, may-alias: {0,7}]  }
   0x1   :  { %s1062_s26 = smov 0  }
   0x2 LB: > { %s29_s27 = sadd.s32 1, %s1010_s25  ;;  %p833_p0 = scmp.ge.s32.totalorder %s1014_s26, 1  ;;  %s1014_s26 = sphi %s1062_s26, %s17_s26   ;;  %s1010_s25 = sphi %s1060_s25, %s1262_s25   ;;  %s1006_s24 = sphi %s1058_s24, %s1261_s24  }
   0x3   : > { %p31_p1 = scmp.ge.s32.totalorder %s29_s27, 2  ;;  %p274_p2 = scmp.lt.s32.totalorder %s1014_s26, 3 }
   0x5   : > { %s1264_s27 = smov (%p31_p1, %s29_s27), 0  ;;  %p275_p3 = pnand %p833_p0, %p274_p2 }
   0x6   : > { %p321_p4 = scmp.lt.s32.totalorder (!%p275_p3), %s1006_s24, 1  ;;  %vm353_vm0 = vcmask (!%p275_p3), 261120   ;;  %v958_v42 = vld [vmem:[%s1256_s3] sm:$0xff] (!%p275_p3)   ;;  %v1016_v43 = vmov (!%p275_p3), 0.0   ;;  %v959_v44 = vld [vmem:[%s1256_s3 + $0x8] sm:$0xff] (!%p275_p3)   ;;  %vm1017_vm1 = vmmov (!%p275_p3), 0  }
   0x7   : > { %278 = sbr.rel (%p275_p3) target bundleno = 808 (0x328), region = 48  ;;  %871 = vmatprep.subr.bf16.mxu0 (!%p275_p3), %v1016_v43  ;;  %915 = vmatprep.subr.bf16.mxu1 (!%p275_p3), %v1016_v43  ;;  %v960_v45 = vld [vmem:[%s1258_s5] sm:$0xff] (!%p275_p3)   ;;  %v961_v46 = vld [vmem:[%s1258_s5 + $0x8] sm:$0xff] (!%p275_p3)  }
   0x8   : > { %872 = vmatpush3.bf16.msra.mxu0 (!%p275_p3), %v958_v42  ;;  %875 = vmatprep.mubr.msk.bf16.mxu0 (!%p275_p3), %vm1017_vm1, %v1016_v43  ;;  %v838_v42 = vld [vmem:[%s1257_s4] ss:$0 sm:$0xff] (!%p275_p3) }
   0x9   : > { %873 = vmatprep.subr.bf16.mxu0 (!%p275_p3), %v1016_v43  ;;  %907 = vmatprep.mubr.msk.bf16.mxu1 (!%p275_p3), %vm1017_vm1, %v1016_v43 }
   0xa   : > { %923 = vmatpush3.bf16.msra.mxu1 (!%p275_p3), %v960_v45 }
   0xb   : > { %916 = vmatprep.subr.bf16.mxu1 (!%p275_p3), %v1016_v43 }
   0xc   : > { %874 = vmatpush3.bf16.msra.mxu0 (!%p275_p3), %v959_v44 }
   0xd   : > { %887 = vmatprep.subr.bf16.mxu0 (!%p275_p3), %v1016_v43 }
   0xe   : > { %s1266_s24 = smov (!%p321_p4, %s1006_s24), 1  ;;  %924 = vmatpush3.bf16.msra.mxu1 %v961_v46 }
   0xf   : > { %s931_s28 = smul.u32 48, %s1266_s24  ;;  %917 = vmatprep.subr.bf16.mxu1 %v1016_v43  ;;  %s332_s19 = scalar_lea.vmem %s1254_s1, %s1266_s24 }
  0x10   : > { %s335_s22 = scalar_lea.vmem %s1255_s2, %s1266_s24 }
  0x11   : > { %s328_s8 = scalar_lea.vmem %s1253_s0, %s931_s28  ;;  %s344_s23 = scalar_lea.vmem %s1260_s7, %s931_s28 }
  0x12   : > { %v1084_v0 = vld [vmem:[%s328_s8] sm:$0xff]  ;;  %v1086_v1 = vld [vmem:[%s328_s8 + $0x10] sm:$0xff]  ;;  %v1088_v2 = vld [vmem:[%s328_s8 + $0x8] sm:$0xff] }
  0x13   : > { %v354_v3 = vsel %vm353_vm0, %v1084_v0, 0.0  ;;  %v360_v4 = vsel %vm353_vm0, %v1086_v1, 0.0  ;;  %v1094_v5 = vld [vmem:[%s328_s8 + $0x18] sm:$0xff]  ;;  %v357_v6 = vsel %vm353_vm0, %v1088_v2, 0.0  ;;  %v1100_v8 = vld [vmem:[%s328_s8 + $0x20] sm:$0xff]  ;;  %v1102_v9 = vld [vmem:[%s328_s8 + $0x28] sm:$0xff] }
  0x14   : > { %355 = vadd.xlane.f32.xlu0 %v354_v3  ;;  %361 = vadd.xlane.f32.xlu1 %v360_v4  ;;  %v363_v7 = vsel %vm353_vm0, %v1094_v5, 0.0  ;;  %v366_v10 = vsel %vm353_vm0, %v1100_v8, 0.0  ;;  %v369_v11 = vsel %vm353_vm0, %v1102_v9, 0.0 }
  0x18   : > { %358 = vadd.xlane.f32.xlu0 %v357_v6  ;;  %364 = vadd.xlane.f32.xlu1 %v363_v7  ;;  %v836_v7 = vld [vmem:[%s332_s19] ss:$0 sm:$0xff] }
  0x1c   : > { %367 = vadd.xlane.f32.xlu0 %v366_v10  ;;  %370 = vadd.xlane.f32.xlu1 %v369_v11 }
  0xa1   : > { %v356_v12 = vpop.xlane.xlu0 %355  ;;  %v362_v13 = vpop.xlane.xlu1 %361 }
  0xa2   : > { %v373_v14 = vmul.f32 0.03125, %v356_v12  ;;  %v375_v15 = vmul.f32 0.03125, %v362_v13 }
  0xa4   : > { %v1109_v16 = vsub.f32 %v1084_v0, %v373_v14  ;;  %v1112_v17 = vsub.f32 %v1086_v1, %v375_v15  ;;  %v837_v14 = vld [vmem:[%s335_s22] ss:$0 sm:$0xff] }
  0xa5   : > { %v359_v18 = vpop.xlane.xlu0 %358  ;;  %v365_v19 = vpop.xlane.xlu1 %364 }
  0xa6   : > { %v374_v20 = vmul.f32 0.03125, %v359_v18  ;;  %v376_v21 = vmul.f32 0.03125, %v365_v19  ;;  %v385_v22 = vmul.f32 %v1109_v16, %v1109_v16  ;;  %v387_v23 = vmul.f32 %v1112_v17, %v1112_v17 }
  0xa8   : > { %v1119_v24 = vsub.f32 %v1088_v2, %v374_v20  ;;  %v1122_v25 = vsub.f32 %v1094_v5, %v376_v21  ;;  %v391_v26 = vsel %vm353_vm0, %v385_v22, 0.0  ;;  %v397_v29 = vsel %vm353_vm0, %v387_v23, 0.0 }
  0xa9   : > { %392 = vadd.xlane.f32.xlu0 %v391_v26  ;;  %v368_v27 = vpop.xlane.xlu0 %367  ;;  %v371_v28 = vpop.xlane.xlu1 %370 }
  0xaa   : > { %v377_v30 = vmul.f32 0.03125, %v368_v27  ;;  %v378_v31 = vmul.f32 0.03125, %v371_v28  ;;  %v386_v32 = vmul.f32 %v1119_v24, %v1119_v24  ;;  %v388_v33 = vmul.f32 %v1122_v25, %v1122_v25 }
  0xac   : > { %v1131_v34 = vsub.f32 %v1100_v8, %v377_v30  ;;  %v1134_v35 = vsub.f32 %v1102_v9, %v378_v31  ;;  %v394_v36 = vsel %vm353_vm0, %v386_v32, 0.0  ;;  %v400_v37 = vsel %vm353_vm0, %v388_v33, 0.0 }
  0xad   : > { %398 = vadd.xlane.f32.xlu0 %v397_v29  ;;  %395 = vadd.xlane.f32.xlu1 %v394_v36 }
  0xae   : > { %v389_v38 = vmul.f32 %v1131_v34, %v1131_v34  ;;  %v390_v39 = vmul.f32 %v1134_v35, %v1134_v35 }
  0xb0   : > { %v403_v40 = vsel %vm353_vm0, %v389_v38, 0.0  ;;  %v406_v41 = vsel %vm353_vm0, %v390_v39, 0.0  ;;  %v964_v38 = vld [vmem:[%s1258_s5 + $0x20] sm:$0xff]   ;;  %v965_v39 = vld [vmem:[%s1258_s5 + $0x28] sm:$0xff]  }
  0xb1   : > { %401 = vadd.xlane.f32.xlu1 %v400_v37  ;;  %404 = vadd.xlane.f32.xlu0 %v403_v40  ;;  %v963_v37 = vld [vmem:[%s1258_s5 + $0x18] sm:$0xff]   ;;  %v966_v40 = vld [vmem:[%s1258_s5 + $0x30] sm:$0xff]  }
  0xb5   : > { %407 = vadd.xlane.f32.xlu1 %v406_v41  ;;  %v967_v41 = vld [vmem:[%s1258_s5 + $0x38] sm:$0xff]  }
 0x136   : > { %v393_v47 = vpop.xlane.xlu0 %392 }
 0x137   : > { %v409_v48 = vmul.f32 0.03125, %v393_v47 }
 0x139   : > { %v415_v49 = vadd.f32 1e-05, %v409_v48 }
 0x13a   : > { %v396_v50 = vpop.xlane.xlu1 %395  ;;  %v399_v51 = vpop.xlane.xlu0 %398 }
 0x13b   : > { %968 = vrsqrt.f32 %v415_v49  ;;  %v410_v52 = vmul.f32 0.03125, %v396_v50  ;;  %v411_v53 = vmul.f32 0.03125, %v399_v51 }
 0x13d   : > { %v416_v54 = vadd.f32 1e-05, %v410_v52  ;;  %v417_v55 = vadd.f32 1e-05, %v411_v53 }
 0x13e   : > { %v402_v56 = vpop.xlane.xlu1 %401  ;;  %v405_v57 = vpop.xlane.xlu0 %404 }
 0x13f   : > { %970 = vrsqrt.f32 %v416_v54  ;;  %v412_v58 = vmul.f32 0.03125, %v402_v56  ;;  %v413_v60 = vmul.f32 0.03125, %v405_v57 }
 0x140   : > { %972 = vrsqrt.f32 %v417_v55 }
 0x141   : > { %v418_v59 = vadd.f32 1e-05, %v412_v58  ;;  %v419_v3 = vadd.f32 1e-05, %v413_v60 }
 0x142   : > { %v408_v61 = vpop.xlane.xlu1 %407 }
 0x143   : > { %974 = vrsqrt.f32 %v418_v59  ;;  %v414_v62 = vmul.f32 0.03125, %v408_v61 }
 0x145   : > { %v969_v63 = vpop.eup %968  ;;  %v420_v4 = vadd.f32 1e-05, %v414_v62 }
 0x146   : > { %v427_v6 = vmul.f32 %v969_v63, %v1109_v16 }
 0x147   : > { %976 = vrsqrt.f32 %v420_v4 }
 0x148   : > { %978 = vrsqrt.f32 %v419_v3  ;;  %v440_v12 = vmul.f32 %v836_v7, %v427_v6 }
 0x149   : > { %v971_v10 = vpop.eup %970 }
 0x14a   : > { %v428_v11 = vmul.f32 %v971_v10, %v1119_v24  ;;  %v973_v13 = vpop.eup %972  ;;  %v453_v16 = vadd.f32 %v837_v14, %v440_v12 }
 0x14b   : > { %v429_v19 = vmul.f32 %v973_v13, %v1112_v17 }
 0x14c   : > { %v441_v15 = vmul.f32 %v836_v7, %v428_v11 }
 0x14d   : > { %v975_v18 = vpop.eup %974  ;;  %v442_v27 = vmul.f32 %v836_v7, %v429_v19 }
 0x14e   : > { %v430_v20 = vmul.f32 %v975_v18, %v1122_v25  ;;  %v454_v21 = vadd.f32 %v837_v14, %v441_v15 }
 0x14f   : > { %v455_v25 = vadd.f32 %v837_v14, %v442_v27 }
 0x150   : > { %v459_v22 = vpack.c.bf16 %v454_v21, %v453_v16  ;;  %v443_v23 = vmul.f32 %v836_v7, %v430_v20 }
 0x151   : > { %v977_v26 = vpop.eup %976 }
 0x152   : > { %876 = vmatmul.mubr.msk.bf16.vlgmr.msra.gmra.mrb[0].mxu0 %vm353_vm0, %v459_v22  ;;  %v979_v28 = vpop.eup %978  ;;  %v432_v24 = vmul.f32 %v977_v26, %v1134_v35  ;;  %v456_v29 = vadd.f32 %v837_v14, %v443_v23 }
 0x153   : > { %879 = vmatprep.mubr.msk.bf16.mxu0 %vm1017_vm1, %v1016_v43  ;;  %888 = vmatpush3.bf16.msra.mxu0 %v960_v45  ;;  %v431_v17 = vmul.f32 %v979_v28, %v1131_v34  ;;  %v962_v34 = vld [vmem:[%s1258_s5 + $0x10] sm:$0xff]  }
 0x154   : > { %889 = vmatprep.subr.bf16.mxu0 %v1016_v43  ;;  %v460_v30 = vpack.c.bf16 %v456_v29, %v455_v25  ;;  %v445_v31 = vmul.f32 %v836_v7, %v432_v24  ;;  %925 = vmatpush3.bf16.msra.mxu1 %v962_v34 }
 0x155   : > { %v444_v32 = vmul.f32 %v836_v7, %v431_v17  ;;  %918 = vmatprep.subr.bf16.mxu1 %v1016_v43 }
 0x156   : > { %v458_v33 = vadd.f32 %v837_v14, %v445_v31 }
 0x157   : > { %890 = vmatpush3.bf16.msra.mxu0 %v961_v46  ;;  %v457_v36 = vadd.f32 %v837_v14, %v444_v32 }
 0x158   : > { %891 = vmatprep.subr.bf16.mxu0 %v1016_v43  ;;  %926 = vmatpush3.bf16.msra.mxu1 %v963_v37 }
 0x159   : > { %v461_v35 = vpack.c.bf16 %v458_v33, %v457_v36  ;;  %919 = vmatprep.subr.bf16.mxu1 %v1016_v43 }
 0x15a   : > { %880 = vmatmul.mubr.msk.bf16.gmra.mrb[4].mxu0 %vm353_vm0, %v460_v30 }
 0x15b   : > { %883 = vmatprep.mubr.msk.bf16.mxu0 %vm1017_vm1, %v1016_v43  ;;  %892 = vmatpush3.bf16.msra.mxu0 %v962_v34 }
 0x15c   : > { %893 = vmatprep.subr.bf16.mxu0 %v1016_v43  ;;  %927 = vmatpush3.bf16.msra.mxu1 %v964_v38 }
 0x15d   : > { %920 = vmatprep.subr.bf16.mxu1 %v1016_v43 }
 0x15f   : > { %894 = vmatpush3.bf16.msra.mxu0 %v963_v37  ;;  %v844_v37 = vld [vmem:[%s1259_s6] ss:$0 sm:$0xff] }
 0x160   : > { %895 = vmatprep.subr.bf16.mxu0 %v1016_v43  ;;  %928 = vmatpush3.bf16.msra.mxu1 %v965_v39 }
 0x161   : > { %921 = vmatprep.subr.bf16.mxu1 %v1016_v43 }
 0x162   : > { %884 = vmatmul.mubr.msk.bf16.gmra.mrb[8].mxu0 %vm353_vm0, %v461_v35 }
 0x163   : > { %903 = vmatprep.mubr.msk.bf16.mxu0 %vm1017_vm1, %v1016_v43  ;;  %896 = vmatpush3.bf16.msra.mxu0 %v964_v38 }
 0x164   : > { %897 = vmatprep.subr.bf16.mxu0 %v1016_v43  ;;  %929 = vmatpush3.bf16.msra.mxu1 %v966_v40 }
 0x165   : > { %922 = vmatprep.subr.bf16.mxu1 %v1016_v43 }
 0x167   : > { %898 = vmatpush3.bf16.msra.mxu0 %v965_v39 }
 0x168   : > { %899 = vmatprep.subr.bf16.mxu0 %v1016_v43  ;;  %930 = vmatpush3.bf16.msra.mxu1 %v967_v41 }
 0x16b   : > { %900 = vmatpush3.bf16.msra.mxu0 %v966_v40 }
 0x16c   : > { %901 = vmatprep.subr.bf16.mxu0 %v1016_v43 }
 0x16f   : > { %902 = vmatpush3.bf16.msra.mxu0 %v967_v41 }
 0x225   : > { %v528_v44 = vpop.f32.mrb[0].mxu0 }
 0x226   : > { %v529_v45 = vadd.f32 %v838_v42, %v528_v44  ;;  %v877_v46 = vpop.f32.mrb[1].mxu0 }
 0x227   : > { %v531_v47 = vpop.f32.mrb[2].mxu0 }
 0x228   : > { %v557_v48 = vmul.f32 0.70710677, %v529_v45  ;;  %v532_v49 = vadd.f32 %v838_v42, %v531_v47  ;;  %v878_v50 = vpop.f32.mrb[3].mxu0  ;;  %v551_v6 = vmul.f32 0.5, %v529_v45 }
 0x22a   : > { %980 = verf.f32 %v557_v48  ;;  %v558_v51 = vmul.f32 0.70710677, %v532_v49  ;;  %v552_v7 = vmul.f32 0.5, %v532_v49 }
 0x22c   : > { %982 = verf.f32 %v558_v51 }
 0x22d   : > { %v536_v52 = vpop.f32.mrb[4].mxu0 }
 0x22e   : > { %v537_v53 = vadd.f32 %v838_v42, %v536_v52  ;;  %v881_v54 = vpop.f32.mrb[5].mxu0 }
 0x22f   : > { %v539_v55 = vpop.f32.mrb[6].mxu0 }
 0x230   : > { %v559_v56 = vmul.f32 0.70710677, %v537_v53  ;;  %v540_v57 = vadd.f32 %v838_v42, %v539_v55  ;;  %v882_v58 = vpop.f32.mrb[7].mxu0  ;;  %v553_v23 = vmul.f32 0.5, %v537_v53 }
 0x232   : > { %984 = verf.f32 %v559_v56  ;;  %v560_v59 = vmul.f32 0.70710677, %v540_v57  ;;  %v554_v26 = vmul.f32 0.5, %v540_v57 }
 0x234   : > { %v981_v60 = vpop.eup %980  ;;  %986 = verf.f32 %v560_v59 }
 0x235   : > { %v569_v61 = vadd.f32 1.0, %v981_v60  ;;  %v544_v62 = vpop.f32.mrb[8].mxu0 }
 0x236   : > { %v983_v63 = vpop.eup %982  ;;  %v545_v3 = vadd.f32 %v838_v42, %v544_v62  ;;  %v885_v4 = vpop.f32.mrb[9].mxu0 }
 0x237   : > { %v570_v10 = vadd.f32 1.0, %v983_v63  ;;  %v547_v11 = vpop.f32.mrb[10].mxu0  ;;  %v575_v15 = vmul.f32 %v569_v61, %v551_v6 }
 0x238   : > { %v561_v12 = vmul.f32 0.70710677, %v545_v3  ;;  %v548_v13 = vadd.f32 %v838_v42, %v547_v11  ;;  %v886_v14 = vpop.f32.mrb[11].mxu0  ;;  %v555_v31 = vmul.f32 0.5, %v545_v3 }
 0x239   : > { %v576_v18 = vmul.f32 %v570_v10, %v552_v7 }
 0x23a   : > { %988 = verf.f32 %v561_v12  ;;  %v562_v19 = vmul.f32 0.70710677, %v548_v13  ;;  %v556_v32 = vmul.f32 0.5, %v548_v13 }
 0x23b   : > { %v581_v20 = vpack.c.bf16 %v576_v18, %v575_v15 }
 0x23c   : > { %v985_v16 = vpop.eup %984  ;;  %990 = verf.f32 %v562_v19 }
 0x23d   : > { %v571_v21 = vadd.f32 1.0, %v985_v16  ;;  %904 = vmatmul.mubr.bf16.vlgmr.msra.gmra.mrb[12].mxu0 %v581_v20 }
 0x23e   : > { %v987_v22 = vpop.eup %986 }
 0x23f   : > { %v572_v27 = vadd.f32 1.0, %v987_v22  ;;  %v577_v28 = vmul.f32 %v571_v21, %v553_v23 }
 0x241   : > { %v578_v24 = vmul.f32 %v572_v27, %v554_v26 }
 0x243   : > { %v582_v29 = vpack.c.bf16 %v578_v24, %v577_v28 }
 0x244   : > { %v989_v17 = vpop.eup %988 }
 0x245   : > { %v573_v25 = vadd.f32 1.0, %v989_v17  ;;  %908 = vmatmul.mubr.bf16.vlgmr.msra.gmra.mrb[0].mxu1 %v582_v29 }
 0x246   : > { %v991_v30 = vpop.eup %990  ;;  %911 = vmatprep.mubr.msk.bf16.mxu1 %vm1017_vm1, %v1016_v43 }
 0x247   : > { %v574_v33 = vadd.f32 1.0, %v991_v30  ;;  %v579_v36 = vmul.f32 %v573_v25, %v555_v31 }
 0x249   : > { %v580_v35 = vmul.f32 %v574_v33, %v556_v32 }
 0x24b   : > { %v583_v34 = vpack.c.bf16 %v580_v35, %v579_v36 }
 0x24d   : > { %912 = vmatmul.mubr.bf16.gmra.mrb[4].mxu1 %v583_v34 }
 0x310   : > { %v689_v38 = vpop.f32.mrb[12].mxu0 }
 0x311   : > { %v690_v39 = vadd.f32 %v844_v37, %v689_v38  ;;  %v905_v40 = vpop.f32.mrb[13].mxu0 }
 0x312   : > { %v692_v43 = vpop.f32.mrb[14].mxu0 }
 0x313   : > { %v712_v41 = vadd.f32 %v690_v39, %v1084_v0  ;;  %v693_v42 = vadd.f32 %v844_v37, %v692_v43  ;;  %v906_v44 = vpop.f32.mrb[15].mxu0 }
 0x315   : > { %718 = vst.msk [vmem:[%s344_s23] sm:$0xff] %vm353_vm0, %v712_v41  ;;  %v713_v45 = vadd.f32 %v693_v42, %v1088_v2 }
 0x317   : > { %719 = vst.msk [vmem:[%s344_s23 + $0x8] sm:$0xff] %vm353_vm0, %v713_v45 }
 0x318   : > { %v697_v46 = vpop.f32.mrb[0].mxu1 }
 0x319   : > { %v698_v47 = vadd.f32 %v844_v37, %v697_v46  ;;  %v909_v48 = vpop.f32.mrb[1].mxu1 }
 0x31a   : > { %v700_v49 = vpop.f32.mrb[2].mxu1 }
 0x31b   : > { %v714_v50 = vadd.f32 %v698_v47, %v1086_v1  ;;  %v701_v51 = vadd.f32 %v844_v37, %v700_v49  ;;  %v910_v52 = vpop.f32.mrb[3].mxu1 }
 0x31d   : > { %720 = vst.msk [vmem:[%s344_s23 + $0x10] sm:$0xff] %vm353_vm0, %v714_v50  ;;  %v715_v0 = vadd.f32 %v701_v51, %v1094_v5 }
 0x31f   : > { %721 = vst.msk [vmem:[%s344_s23 + $0x18] sm:$0xff] %vm353_vm0, %v715_v0 }
 0x320   : > { %v705_v53 = vpop.f32.mrb[4].mxu1 }
 0x321   : > { %v706_v54 = vadd.f32 %v844_v37, %v705_v53  ;;  %v913_v55 = vpop.f32.mrb[5].mxu1 }
 0x322   : > { %v708_v2 = vpop.f32.mrb[6].mxu1 }
 0x323   : > { %v716_v56 = vadd.f32 %v706_v54, %v1100_v8  ;;  %v709_v57 = vadd.f32 %v844_v37, %v708_v2  ;;  %v914_v58 = vpop.f32.mrb[7].mxu1 }
 0x325   : > { %722 = vst.msk [vmem:[%s344_s23 + $0x20] sm:$0xff] %vm353_vm0, %v716_v56  ;;  %v717_v1 = vadd.f32 %v709_v57, %v1102_v9 }
 0x327   : > { %723 = vst.msk [vmem:[%s344_s23 + $0x28] sm:$0xff] %vm353_vm0, %v717_v1 }
 0x328 PF: > { %s17_s26 = sadd.s32 1, %s1014_s26   ;;  %s1261_s24 = smov %s1010_s25 }
 0x329   : > { %p14_p5 = scmp.ge.s32.totalorder %s17_s26, 4   ;;  %s1262_s25 = smov %s1264_s27 }
 0x32b   :  { %16 = sbr.rel (!%p14_p5) target bundleno = 2 (0x2), region = 84 }

</bundles_post_ra>
